<compile_context>
chip_gen: v7x
topology: tpu7x:2x2x1
jax: 0.10.0
libtpu: 0.0.40
codegen_flags: <defaults>
</compile_context>

<pallas_src>
import math
from functools import partial

import jax
import jax.numpy as jnp
from jax.experimental import pallas as pl
from jax.experimental.pallas import tpu as pltpu


def _split_heads(x, n_heads, d_head):
    """(rows, n_heads*d_head) -> (n_heads, rows, d_head).

    Static column slices stacked along a NEW LEADING (major) axis: avoids a
    lane-splitting reshape and keeps each head's lane block contiguous, so the
    downstream batched dot_generals see dense operands."""
    return jnp.stack(
        [x[:, h * d_head:(h + 1) * d_head] for h in range(n_heads)], axis=0)


def mha_kernel(q_ref, k_ref, v_ref, mask_ref,
               wq_ref, bq_ref, wk_ref, bk_ref, wv_ref, bv_ref, wo_ref, bo_ref,
               o_ref, kp_scratch, vp_scratch,
               *, n_heads: int, d_head: int):
    qi = pl.program_id(1)
    scale = 1.0 / math.sqrt(d_head)

    # ---- K/V projection: once per batch element (first query tile) ----------
    @pl.when(qi == 0)
    def _():
        k_in = k_ref[0].astype(jnp.bfloat16)                         # (S, D)
        v_in = v_ref[0].astype(jnp.bfloat16)                         # (S, D)
        kp = jnp.dot(k_in, wk_ref[...],
                     preferred_element_type=jnp.float32) + bk_ref[...]
        vp = jnp.dot(v_in, wv_ref[...],
                     preferred_element_type=jnp.float32) + bv_ref[...]
        kp_scratch[...] = _split_heads(kp, n_heads, d_head).astype(jnp.bfloat16)
        vp_scratch[...] = _split_heads(vp, n_heads, d_head).astype(jnp.bfloat16)

    # ---- Q projection for this query tile (full-width MXU matmul) -----------
    q_in = q_ref[0].astype(jnp.bfloat16)                             # (TQ, D)
    qp = jnp.dot(q_in, wq_ref[...],
                 preferred_element_type=jnp.float32) + bq_ref[...]   # (TQ, D) f32
    qh = _split_heads(qp, n_heads, d_head).astype(jnp.bfloat16)      # (H, TQ, dh)

    kh = kp_scratch[...]                                             # (H, S, dh) bf16
    vh = vp_scratch[...]                                             # (H, S, dh) bf16

    # ---- scores = Q K^T / sqrt(dh): one batched contraction over heads ------
    s = jnp.einsum("hqd,hkd->hqk", qh, kh,
                   preferred_element_type=jnp.float32) * scale       # (H, TQ, S) f32

    # masked_fill(mask == 0, -1e9); mask broadcast over heads (computed once).
    mask = mask_ref[0]                                               # (TQ, S)
    s = jnp.where(mask[None, :, :] == 0, -1e9, s)

    # ---- softmax over keys (f32); denominator reciprocal on the EUP ---------
    s = s - jnp.max(s, axis=-1, keepdims=True)
    p = jnp.exp(s)
    p = p * pl.reciprocal(jnp.sum(p, axis=-1, keepdims=True), approx=True)

    # ---- context = P V: one batched contraction over heads ------------------
    ctx = jnp.einsum("hqk,hkd->hqd", p.astype(jnp.bfloat16), vh,
                     preferred_element_type=jnp.float32)             # (H, TQ, dh)

    # ---- output projection: per-head contraction + sum (no lane concat) -----
    out_h = jnp.einsum("hqd,hdm->hqm", ctx.astype(jnp.bfloat16), wo_ref[...],
                       preferred_element_type=jnp.float32)           # (H, TQ, D)
    out = jnp.sum(out_h, axis=0) + bo_ref[...]                       # (TQ, D)
    o_ref[0] = out.astype(o_ref.dtype)


def multi_head_attention(q, k, v, mask, params, *, n_heads: int, tile_q=None):
    """q, k, v: (B, S, D) float32; mask: (B, S, S) (nonzero = keep) or None.

    params: nn.Linear weights pre-transposed to (in, out) plus (1, D) biases.
    """
    B, S, D = q.shape
    d_head = D // n_heads

    if mask is None:
        mask = jnp.ones((B, S, S), jnp.float32)

    if tile_q is None:
        tile_q = min(S, 128)
    assert S % tile_q == 0, "seq_len must be a multiple of tile_q"
    n_q_tiles = S // tile_q

    # bf16 MXU operands (kernel accumulates in f32); biases stay f32.
    wq = params["wq"].astype(jnp.bfloat16)
    wk = params["wk"].astype(jnp.bfloat16)
    wv = params["wv"].astype(jnp.bfloat16)
    # Fold the head-concat into the output projection: (D, D) -> (H, dh, D).
    wo = params["wo"].reshape(n_heads, d_head, D).astype(jnp.bfloat16)
    bq, bk, bv, bo = params["bq"], params["bk"], params["bv"], params["bo"]

    q_spec = pl.BlockSpec((1, tile_q, D), lambda b, t: (b, t, 0))
    kv_spec = pl.BlockSpec((1, S, D), lambda b, t: (b, 0, 0))
    mask_spec = pl.BlockSpec((1, tile_q, S), lambda b, t: (b, t, 0))
    w_spec = pl.BlockSpec((D, D), lambda b, t: (0, 0))
    wo_spec = pl.BlockSpec((n_heads, d_head, D), lambda b, t: (0, 0, 0))
    b_spec = pl.BlockSpec((1, D), lambda b, t: (0, 0))
    out_spec = pl.BlockSpec((1, tile_q, D), lambda b, t: (b, t, 0))

    kernel = partial(mha_kernel, n_heads=n_heads, d_head=d_head)

    return pl.pallas_call(
        kernel,
        out_shape=jax.ShapeDtypeStruct((B, S, D), q.dtype),
        grid_spec=pltpu.PrefetchScalarGridSpec(
            num_scalar_prefetch=0,
            grid=(B, n_q_tiles),
            in_specs=[q_spec, kv_spec, kv_spec, mask_spec,
                      w_spec, b_spec, w_spec, b_spec, w_spec, b_spec,
                      wo_spec, b_spec],
            out_specs=out_spec,
            scratch_shapes=[pltpu.VMEM((n_heads, S, d_head), jnp.bfloat16),
                            pltpu.VMEM((n_heads, S, d_head), jnp.bfloat16)],
        ),
        # Batch axis -> megacore parallel. Query-tile axis must stay "arbitrary"
        # because it carries the per-batch K/V projection scratch (tile 0 writes it).
        compiler_params=pltpu.CompilerParams(
            dimension_semantics=("parallel", "arbitrary"),
            vmem_limit_bytes=32 * 1024 * 1024,
        ),
    )(q, k, v, mask, wq, bq, wk, bk, wv, bv, wo, bo)


def reference_mha(q, k, v, mask, params, *, n_heads: int):
    """Pure-JAX f32 reference mirroring the PyTorch forward (eval mode)."""
    B, S, D = q.shape
    dh = D // n_heads

    def proj(x, w, b):
        return x @ w + b  # w is (in, out)

    qp = proj(q, params["wq"], params["bq"]).reshape(B, S, n_heads, dh).transpose(0, 2, 1, 3)
    kp = proj(k, params["wk"], params["bk"]).reshape(B, S, n_heads, dh).transpose(0, 2, 1, 3)
    vp = proj(v, params["wv"], params["bv"]).reshape(B, S, n_heads, dh).transpose(0, 2, 1, 3)

    scores = jnp.einsum("bhqd,bhkd->bhqk", qp, kp) / math.sqrt(dh)
    scores = jnp.where(mask[:, None, :, :] == 0, -1e9, scores)
    probs = jax.nn.softmax(scores, axis=-1)
    ctx = jnp.einsum("bhqk,bhkd->bhqd", probs, vp)
    ctx = ctx.transpose(0, 2, 1, 3).reshape(B, S, D)
    return proj(ctx, params["wo"], params["bo"])


if __name__ == "__main__":
    B, S, D, H = 2, 16, 32, 4
    TQ = 8  # two query tiles per batch element -> exercises the (B, S//TQ) grid

    key = jax.random.PRNGKey(0)
    keys = jax.random.split(key, 12)

    def linear_params(kw, kb, fan_in):
        bound = 1.0 / math.sqrt(fan_in)
        # nn.Linear-style uniform init, stored as (in, out) = W^T
        w = jax.random.uniform(kw, (fan_in, D), jnp.float32, -bound, bound)
        b = jax.random.uniform(kb, (1, D), jnp.float32, -bound, bound)
        return w, b

    wq, bq = linear_params(keys[0], keys[1], D)
    wk, bk = linear_params(keys[2], keys[3], D)
    wv, bv = linear_params(keys[4], keys[5], D)
    wo, bo = linear_params(keys[6], keys[7], D)
    params = dict(wq=wq, bq=bq, wk=wk, bk=bk, wv=wv, bv=bv, wo=wo, bo=bo)

    q = jax.random.normal(keys[8], (B, S, D), jnp.float32)
    k = jax.random.normal(keys[9], (B, S, D), jnp.float32)
    v = jax.random.normal(keys[10], (B, S, D), jnp.float32)
    # Causal-ish mask (nonzero = keep), same semantics as masked_fill(mask == 0, -1e9)
    mask = jnp.tril(jnp.ones((S, S), jnp.float32))[None].repeat(B, axis=0)

    out = multi_head_attention(q, k, v, mask, params, n_heads=H, tile_q=TQ)
    out = jax.block_until_ready(out)

    ref = reference_mha(q, k, v, mask, params, n_heads=H)
    assert out.shape == (B, S, D)
    max_err = jnp.max(jnp.abs(out - ref))
    # bf16 MXU operands (f32 accumulation) -> tolerance loosened vs pure f32.
    assert jnp.allclose(out, ref, atol=5e-2, rtol=5e-2), f"max abs err {max_err}"

    print("KERNEL_OK")
</pallas_src>

<mosaic_0001>
module attributes {stable_mosaic.version = 11 : i64} {
  func.func @mha_kernel(%arg0: i32, %arg1: i32, %arg2: memref<1x8x32xf32, #tpu.memory_space<vmem>>, %arg3: memref<1x16x32xf32, #tpu.memory_space<vmem>>, %arg4: memref<1x16x32xf32, #tpu.memory_space<vmem>>, %arg5: memref<1x8x16xf32, #tpu.memory_space<vmem>>, %arg6: memref<32x32xbf16, #tpu.memory_space<vmem>>, %arg7: memref<1x32xf32, #tpu.memory_space<vmem>>, %arg8: memref<32x32xbf16, #tpu.memory_space<vmem>>, %arg9: memref<1x32xf32, #tpu.memory_space<vmem>>, %arg10: memref<32x32xbf16, #tpu.memory_space<vmem>>, %arg11: memref<1x32xf32, #tpu.memory_space<vmem>>, %arg12: memref<4x8x32xbf16, #tpu.memory_space<vmem>>, %arg13: memref<1x32xf32, #tpu.memory_space<vmem>>, %arg14: memref<1x8x32xf32, #tpu.memory_space<vmem>>, %arg15: memref<4x16x8xbf16, #tpu.memory_space<vmem>>, %arg16: memref<4x16x8xbf16, #tpu.memory_space<vmem>>) attributes {dimension_semantics = [#tpu.dimension_semantics<parallel>, #tpu.dimension_semantics<arbitrary>], iteration_bounds = array<i64: 2, 2>, scalar_prefetch = 0 : i64, scratch_operands = 2 : i64, tpu.core_type = #tpu.core_type<tc>, window_params = [{transform_indices = @transform_0, window_bounds = array<i64: 1, 8, 32>}, {transform_indices = @transform_1, window_bounds = array<i64: 1, 16, 32>}, {transform_indices = @transform_2, window_bounds = array<i64: 1, 16, 32>}, {transform_indices = @transform_3, window_bounds = array<i64: 1, 8, 16>}, {pipeline_mode = #tpu.pipeline_mode<synchronous>, transform_indices = @transform_4, window_bounds = array<i64: 32, 32>}, {pipeline_mode = #tpu.pipeline_mode<synchronous>, transform_indices = @transform_5, window_bounds = array<i64: 1, 32>}, {pipeline_mode = #tpu.pipeline_mode<synchronous>, transform_indices = @transform_6, window_bounds = array<i64: 32, 32>}, {pipeline_mode = #tpu.pipeline_mode<synchronous>, transform_indices = @transform_7, window_bounds = array<i64: 1, 32>}, {pipeline_mode = #tpu.pipeline_mode<synchronous>, transform_indices = @transform_8, window_bounds = array<i64: 32, 32>}, {pipeline_mode = #tpu.pipeline_mode<synchronous>, transform_indices = @transform_9, window_bounds = array<i64: 1, 32>}, {pipeline_mode = #tpu.pipeline_mode<synchronous>, transform_indices = @transform_10, window_bounds = array<i64: 4, 8, 32>}, {pipeline_mode = #tpu.pipeline_mode<synchronous>, transform_indices = @transform_11, window_bounds = array<i64: 1, 32>}, {transform_indices = @transform_12, window_bounds = array<i64: 1, 8, 32>}]} {
    %c0_i32 = arith.constant 0 : i32
    %0 = arith.cmpi eq, %arg1, %c0_i32 : i32
    %1 = arith.extui %0 : i1 to i32
    %c0_i32_0 = arith.constant 0 : i32
    %2 = arith.cmpi ne, %1, %c0_i32_0 : i32
    scf.if %2 {
      %c0_33 = arith.constant 0 : index
      %c0_34 = arith.constant 0 : index
      %c0_35 = arith.constant 0 : index
      %57 = vector.load %arg3[%c0_33, %c0_34, %c0_35] : memref<1x16x32xf32, #tpu.memory_space<vmem>>, vector<1x16x32xf32>
      %58 = vector.shape_cast %57 : vector<1x16x32xf32> to vector<16x32xf32>
      %59 = arith.truncf %58 : vector<16x32xf32> to vector<16x32xbf16>
      %c0_36 = arith.constant 0 : index
      %c0_37 = arith.constant 0 : index
      %c0_38 = arith.constant 0 : index
      %60 = vector.load %arg4[%c0_36, %c0_37, %c0_38] : memref<1x16x32xf32, #tpu.memory_space<vmem>>, vector<1x16x32xf32>
      %61 = vector.shape_cast %60 : vector<1x16x32xf32> to vector<16x32xf32>
      %62 = arith.truncf %61 : vector<16x32xf32> to vector<16x32xbf16>
      %c0_39 = arith.constant 0 : index
      %c0_40 = arith.constant 0 : index
      %63 = vector.load %arg8[%c0_39, %c0_40] : memref<32x32xbf16, #tpu.memory_space<vmem>>, vector<32x32xbf16>
      %cst_41 = arith.constant dense<0.000000e+00> : vector<16x32xf32>
      %64 = tpu.matmul %59, %63, %cst_41 {dimension_numbers = #tpu.dot_dimension_numbers<[1], [0], [0], [1], [0, 0, 1, 1], [], []>} : vector<16x32xbf16>, vector<32x32xbf16>, vector<16x32xf32> -> vector<16x32xf32>
      %c0_42 = arith.constant 0 : index
      %c0_43 = arith.constant 0 : index
      %65 = vector.load %arg9[%c0_42, %c0_43] : memref<1x32xf32, #tpu.memory_space<vmem>>, vector<1x32xf32>
      %66 = vector.broadcast %65 : vector<1x32xf32> to vector<16x32xf32>
      %67 = arith.addf %64, %66 : vector<16x32xf32>
      %c0_44 = arith.constant 0 : index
      %c0_45 = arith.constant 0 : index
      %68 = vector.load %arg10[%c0_44, %c0_45] : memref<32x32xbf16, #tpu.memory_space<vmem>>, vector<32x32xbf16>
      %cst_46 = arith.constant dense<0.000000e+00> : vector<16x32xf32>
      %69 = tpu.matmul %62, %68, %cst_46 {dimension_numbers = #tpu.dot_dimension_numbers<[1], [0], [0], [1], [0, 0, 1, 1], [], []>} : vector<16x32xbf16>, vector<32x32xbf16>, vector<16x32xf32> -> vector<16x32xf32>
      %c0_47 = arith.constant 0 : index
      %c0_48 = arith.constant 0 : index
      %70 = vector.load %arg11[%c0_47, %c0_48] : memref<1x32xf32, #tpu.memory_space<vmem>>, vector<1x32xf32>
      %71 = vector.broadcast %70 : vector<1x32xf32> to vector<16x32xf32>
      %72 = arith.addf %69, %71 : vector<16x32xf32>
      %73 = vector.extract_strided_slice %67 {offsets = [0, 0], sizes = [16, 8], strides = [1, 1]} : vector<16x32xf32> to vector<16x8xf32>
      %74 = vector.extract_strided_slice %67 {offsets = [0, 8], sizes = [16, 8], strides = [1, 1]} : vector<16x32xf32> to vector<16x8xf32>
      %75 = vector.extract_strided_slice %67 {offsets = [0, 16], sizes = [16, 8], strides = [1, 1]} : vector<16x32xf32> to vector<16x8xf32>
      %76 = vector.extract_strided_slice %67 {offsets = [0, 24], sizes = [16, 8], strides = [1, 1]} : vector<16x32xf32> to vector<16x8xf32>
      %77 = vector.shape_cast %73 : vector<16x8xf32> to vector<1x16x8xf32>
      %78 = vector.shape_cast %74 : vector<16x8xf32> to vector<1x16x8xf32>
      %79 = vector.shape_cast %75 : vector<16x8xf32> to vector<1x16x8xf32>
      %80 = vector.shape_cast %76 : vector<16x8xf32> to vector<1x16x8xf32>
      %81 = tpu.concatenate %77, %78, %79, %80 in 0 : vector<1x16x8xf32>, vector<1x16x8xf32>, vector<1x16x8xf32>, vector<1x16x8xf32> -> vector<4x16x8xf32>
      %82 = arith.truncf %81 : vector<4x16x8xf32> to vector<4x16x8xbf16>
      %c0_49 = arith.constant 0 : index
      %c0_50 = arith.constant 0 : index
      %c0_51 = arith.constant 0 : index
      %83 = vector.load %arg15[%c0_49, %c0_50, %c0_51] : memref<4x16x8xbf16, #tpu.memory_space<vmem>>, vector<4x16x8xbf16>
      tpu.vector_store %arg15[%c0_49, %c0_50, %c0_51], %82 {strides = array<i32>} : memref<4x16x8xbf16, #tpu.memory_space<vmem>>, vector<4x16x8xbf16>,
      %84 = vector.extract_strided_slice %72 {offsets = [0, 0], sizes = [16, 8], strides = [1, 1]} : vector<16x32xf32> to vector<16x8xf32>
      %85 = vector.extract_strided_slice %72 {offsets = [0, 8], sizes = [16, 8], strides = [1, 1]} : vector<16x32xf32> to vector<16x8xf32>
      %86 = vector.extract_strided_slice %72 {offsets = [0, 16], sizes = [16, 8], strides = [1, 1]} : vector<16x32xf32> to vector<16x8xf32>
      %87 = vector.extract_strided_slice %72 {offsets = [0, 24], sizes = [16, 8], strides = [1, 1]} : vector<16x32xf32> to vector<16x8xf32>
      %88 = vector.shape_cast %84 : vector<16x8xf32> to vector<1x16x8xf32>
      %89 = vector.shape_cast %85 : vector<16x8xf32> to vector<1x16x8xf32>
      %90 = vector.shape_cast %86 : vector<16x8xf32> to vector<1x16x8xf32>
      %91 = vector.shape_cast %87 : vector<16x8xf32> to vector<1x16x8xf32>
      %92 = tpu.concatenate %88, %89, %90, %91 in 0 : vector<1x16x8xf32>, vector<1x16x8xf32>, vector<1x16x8xf32>, vector<1x16x8xf32> -> vector<4x16x8xf32>
      %93 = arith.truncf %92 : vector<4x16x8xf32> to vector<4x16x8xbf16>
      %c0_52 = arith.constant 0 : index
      %c0_53 = arith.constant 0 : index
      %c0_54 = arith.constant 0 : index
      %94 = vector.load %arg16[%c0_52, %c0_53, %c0_54] : memref<4x16x8xbf16, #tpu.memory_space<vmem>>, vector<4x16x8xbf16>
      tpu.vector_store %arg16[%c0_52, %c0_53, %c0_54], %93 {strides = array<i32>} : memref<4x16x8xbf16, #tpu.memory_space<vmem>>, vector<4x16x8xbf16>,
    } else {
    }
    %c0 = arith.constant 0 : index
    %c0_1 = arith.constant 0 : index
    %c0_2 = arith.constant 0 : index
    %3 = vector.load %arg2[%c0, %c0_1, %c0_2] : memref<1x8x32xf32, #tpu.memory_space<vmem>>, vector<1x8x32xf32>
    %4 = vector.shape_cast %3 : vector<1x8x32xf32> to vector<8x32xf32>
    %5 = arith.truncf %4 : vector<8x32xf32> to vector<8x32xbf16>
    %c0_3 = arith.constant 0 : index
    %c0_4 = arith.constant 0 : index
    %6 = vector.load %arg6[%c0_3, %c0_4] : memref<32x32xbf16, #tpu.memory_space<vmem>>, vector<32x32xbf16>
    %cst = arith.constant dense<0.000000e+00> : vector<8x32xf32>
    %7 = tpu.matmul %5, %6, %cst {dimension_numbers = #tpu.dot_dimension_numbers<[1], [0], [0], [1], [0, 0, 1, 1], [], []>} : vector<8x32xbf16>, vector<32x32xbf16>, vector<8x32xf32> -> vector<8x32xf32>
    %c0_5 = arith.constant 0 : index
    %c0_6 = arith.constant 0 : index
    %8 = vector.load %arg7[%c0_5, %c0_6] : memref<1x32xf32, #tpu.memory_space<vmem>>, vector<1x32xf32>
    %9 = vector.broadcast %8 : vector<1x32xf32> to vector<8x32xf32>
    %10 = arith.addf %7, %9 : vector<8x32xf32>
    %11 = vector.extract_strided_slice %10 {offsets = [0, 0], sizes = [8, 8], strides = [1, 1]} : vector<8x32xf32> to vector<8x8xf32>
    %12 = vector.extract_strided_slice %10 {offsets = [0, 8], sizes = [8, 8], strides = [1, 1]} : vector<8x32xf32> to vector<8x8xf32>
    %13 = vector.extract_strided_slice %10 {offsets = [0, 16], sizes = [8, 8], strides = [1, 1]} : vector<8x32xf32> to vector<8x8xf32>
    %14 = vector.extract_strided_slice %10 {offsets = [0, 24], sizes = [8, 8], strides = [1, 1]} : vector<8x32xf32> to vector<8x8xf32>
    %15 = vector.shape_cast %11 : vector<8x8xf32> to vector<1x8x8xf32>
    %16 = vector.shape_cast %12 : vector<8x8xf32> to vector<1x8x8xf32>
    %17 = vector.shape_cast %13 : vector<8x8xf32> to vector<1x8x8xf32>
    %18 = vector.shape_cast %14 : vector<8x8xf32> to vector<1x8x8xf32>
    %19 = tpu.concatenate %15, %16, %17, %18 in 0 : vector<1x8x8xf32>, vector<1x8x8xf32>, vector<1x8x8xf32>, vector<1x8x8xf32> -> vector<4x8x8xf32>
    %20 = arith.truncf %19 : vector<4x8x8xf32> to vector<4x8x8xbf16>
    %c0_7 = arith.constant 0 : index
    %c0_8 = arith.constant 0 : index
    %c0_9 = arith.constant 0 : index
    %21 = vector.load %arg15[%c0_7, %c0_8, %c0_9] : memref<4x16x8xbf16, #tpu.memory_space<vmem>>, vector<4x16x8xbf16>
    %c0_10 = arith.constant 0 : index
    %c0_11 = arith.constant 0 : index
    %c0_12 = arith.constant 0 : index
    %22 = vector.load %arg16[%c0_10, %c0_11, %c0_12] : memref<4x16x8xbf16, #tpu.memory_space<vmem>>, vector<4x16x8xbf16>
    "tpu.trace_start"() <{level = 10 : i32, message = "hqd,hkd->hqk"}> : () -> ()
    %cst_13 = arith.constant dense<0.000000e+00> : vector<4x8x16xf32>
    %23 = tpu.matmul %20, %21, %cst_13 {dimension_numbers = #tpu.dot_dimension_numbers<[2], [2], [1], [1], [0, 0, 0, 1, 1, 1], [0], [0]>} : vector<4x8x8xbf16>, vector<4x16x8xbf16>, vector<4x8x16xf32> -> vector<4x8x16xf32>
    "tpu.trace_stop"() : () -> ()
    %cst_14 = arith.constant 0.353553385 : f32
    %24 = vector.broadcast %cst_14 : f32 to vector<4x8x16xf32>
    %25 = arith.mulf %23, %24 : vector<4x8x16xf32>
    %c0_15 = arith.constant 0 : index
    %c0_16 = arith.constant 0 : index
    %c0_17 = arith.constant 0 : index
    %26 = vector.load %arg5[%c0_15, %c0_16, %c0_17] : memref<1x8x16xf32, #tpu.memory_space<vmem>>, vector<1x8x16xf32>
    %27 = vector.shape_cast %26 : vector<1x8x16xf32> to vector<8x16xf32>
    %28 = vector.shape_cast %27 : vector<8x16xf32> to vector<1x8x16xf32>
    %cst_18 = arith.constant 0.000000e+00 : f32
    %29 = vector.broadcast %cst_18 : f32 to vector<1x8x16xf32>
    %30 = arith.cmpf oeq, %28, %29 : vector<1x8x16xf32>
    %cst_19 = arith.constant -1.000000e+09 : f32
    %31 = vector.shape_cast %30 : vector<1x8x16xi1> to vector<1x8x16xi1>
    %32 = vector.broadcast %31 : vector<1x8x16xi1> to vector<4x8x16xi1>
    %33 = vector.broadcast %cst_19 : f32 to vector<4x8x16xf32>
    %34 = arith.select %32, %33, %25 : vector<4x8x16xi1>, vector<4x8x16xf32>
    %cst_20 = arith.constant dense<0xFF800000> : vector<4x8xf32>
    %35 = vector.multi_reduction <maximumf>, %34, %cst_20 [2] : vector<4x8x16xf32> to vector<4x8xf32>
    %36 = vector.shape_cast %35 : vector<4x8xf32> to vector<4x8x1xf32>
    %37 = vector.broadcast %36 : vector<4x8x1xf32> to vector<4x8x16xf32>
    %38 = arith.subf %34, %37 : vector<4x8x16xf32>
    %39 = math.exp %38 : vector<4x8x16xf32>
    %cst_21 = arith.constant dense<0.000000e+00> : vector<4x8xf32>
    %40 = vector.multi_reduction <add>, %39, %cst_21 [2] : vector<4x8x16xf32> to vector<4x8xf32>
    %41 = vector.shape_cast %40 : vector<4x8xf32> to vector<4x8x1xf32>
    %42 = tpu.reciprocal %41 {approx = true} : vector<4x8x1xf32> -> vector<4x8x1xf32>
    %43 = vector.broadcast %42 : vector<4x8x1xf32> to vector<4x8x16xf32>
    %44 = arith.mulf %39, %43 : vector<4x8x16xf32>
    %45 = arith.truncf %44 : vector<4x8x16xf32> to vector<4x8x16xbf16>
    "tpu.trace_start"() <{level = 10 : i32, message = "hqk,hkd->hqd"}> : () -> ()
    %cst_22 = arith.constant dense<0.000000e+00> : vector<4x8x8xf32>
    %46 = tpu.matmul %45, %22, %cst_22 {dimension_numbers = #tpu.dot_dimension_numbers<[2], [1], [1], [2], [0, 0, 0, 1, 1, 2], [0], [0]>} : vector<4x8x16xbf16>, vector<4x16x8xbf16>, vector<4x8x8xf32> -> vector<4x8x8xf32>
    "tpu.trace_stop"() : () -> ()
    %47 = arith.truncf %46 : vector<4x8x8xf32> to vector<4x8x8xbf16>
    %c0_23 = arith.constant 0 : index
    %c0_24 = arith.constant 0 : index
    %c0_25 = arith.constant 0 : index
    %48 = vector.load %arg12[%c0_23, %c0_24, %c0_25] : memref<4x8x32xbf16, #tpu.memory_space<vmem>>, vector<4x8x32xbf16>
    "tpu.trace_start"() <{level = 10 : i32, message = "hqd,hdm->hqm"}> : () -> ()
    %cst_26 = arith.constant dense<0.000000e+00> : vector<4x8x32xf32>
    %49 = tpu.matmul %47, %48, %cst_26 {dimension_numbers = #tpu.dot_dimension_numbers<[2], [1], [1], [2], [0, 0, 0, 1, 1, 2], [0], [0]>} : vector<4x8x8xbf16>, vector<4x8x32xbf16>, vector<4x8x32xf32> -> vector<4x8x32xf32>
    "tpu.trace_stop"() : () -> ()
    %cst_27 = arith.constant dense<0.000000e+00> : vector<8x32xf32>
    %50 = vector.multi_reduction <add>, %49, %cst_27 [0] : vector<4x8x32xf32> to vector<8x32xf32>
    %c0_28 = arith.constant 0 : index
    %c0_29 = arith.constant 0 : index
    %51 = vector.load %arg13[%c0_28, %c0_29] : memref<1x32xf32, #tpu.memory_space<vmem>>, vector<1x32xf32>
    %52 = vector.broadcast %51 : vector<1x32xf32> to vector<8x32xf32>
    %53 = arith.addf %50, %52 : vector<8x32xf32>
    %c0_30 = arith.constant 0 : index
    %c0_31 = arith.constant 0 : index
    %c0_32 = arith.constant 0 : index
    %54 = vector.load %arg14[%c0_30, %c0_31, %c0_32] : memref<1x8x32xf32, #tpu.memory_space<vmem>>, vector<1x8x32xf32>
    %55 = vector.shape_cast %54 : vector<1x8x32xf32> to vector<8x32xf32>
    %56 = vector.shape_cast %53 : vector<8x32xf32> to vector<1x8x32xf32>
    tpu.vector_store %arg14[%c0_30, %c0_31, %c0_32], %56 {strides = array<i32>} : memref<1x8x32xf32, #tpu.memory_space<vmem>>, vector<1x8x32xf32>,
    return
  }
  func.func @transform_0(%arg0: i32, %arg1: i32) -> (i32, i32, i32) {
    %c0_i32 = arith.constant 0 : i32
    %c0_i32_0 = arith.constant 0 : i32
    return %arg0, %arg1, %c0_i32 : i32, i32, i32
  }
  func.func @transform_1(%arg0: i32, %arg1: i32) -> (i32, i32, i32) {
    %c0_i32 = arith.constant 0 : i32
    %c0_i32_0 = arith.constant 0 : i32
    %c0_i32_1 = arith.constant 0 : i32
    return %arg0, %c0_i32, %c0_i32_0 : i32, i32, i32
  }
  func.func @transform_2(%arg0: i32, %arg1: i32) -> (i32, i32, i32) {
    %c0_i32 = arith.constant 0 : i32
    %c0_i32_0 = arith.constant 0 : i32
    %c0_i32_1 = arith.constant 0 : i32
    return %arg0, %c0_i32, %c0_i32_0 : i32, i32, i32
  }
  func.func @transform_3(%arg0: i32, %arg1: i32) -> (i32, i32, i32) {
    %c0_i32 = arith.constant 0 : i32
    %c0_i32_0 = arith.constant 0 : i32
    return %arg0, %arg1, %c0_i32 : i32, i32, i32
  }
  func.func @transform_4(%arg0: i32, %arg1: i32) -> (i32, i32) {
    %c0_i32 = arith.constant 0 : i32
    %c0_i32_0 = arith.constant 0 : i32
    %c0_i32_1 = arith.constant 0 : i32
    return %c0_i32, %c0_i32_0 : i32, i32
  }
  func.func @transform_5(%arg0: i32, %arg1: i32) -> (i32, i32) {
    %c0_i32 = arith.constant 0 : i32
    %c0_i32_0 = arith.constant 0 : i32
    %c0_i32_1 = arith.constant 0 : i32
    return %c0_i32, %c0_i32_0 : i32, i32
  }
  func.func @transform_6(%arg0: i32, %arg1: i32) -> (i32, i32) {
    %c0_i32 = arith.constant 0 : i32
    %c0_i32_0 = arith.constant 0 : i32
    %c0_i32_1 = arith.constant 0 : i32
    return %c0_i32, %c0_i32_0 : i32, i32
  }
  func.func @transform_7(%arg0: i32, %arg1: i32) -> (i32, i32) {
    %c0_i32 = arith.constant 0 : i32
    %c0_i32_0 = arith.constant 0 : i32
    %c0_i32_1 = arith.constant 0 : i32
    return %c0_i32, %c0_i32_0 : i32, i32
  }
  func.func @transform_8(%arg0: i32, %arg1: i32) -> (i32, i32) {
    %c0_i32 = arith.constant 0 : i32
    %c0_i32_0 = arith.constant 0 : i32
    %c0_i32_1 = arith.constant 0 : i32
    return %c0_i32, %c0_i32_0 : i32, i32
  }
  func.func @transform_9(%arg0: i32, %arg1: i32) -> (i32, i32) {
    %c0_i32 = arith.constant 0 : i32
    %c0_i32_0 = arith.constant 0 : i32
    %c0_i32_1 = arith.constant 0 : i32
    return %c0_i32, %c0_i32_0 : i32, i32
  }
  func.func @transform_10(%arg0: i32, %arg1: i32) -> (i32, i32, i32) {
    %c0_i32 = arith.constant 0 : i32
    %c0_i32_0 = arith.constant 0 : i32
    %c0_i32_1 = arith.constant 0 : i32
    %c0_i32_2 = arith.constant 0 : i32
    return %c0_i32, %c0_i32_0, %c0_i32_1 : i32, i32, i32
  }
  func.func @transform_11(%arg0: i32, %arg1: i32) -> (i32, i32) {
    %c0_i32 = arith.constant 0 : i32
    %c0_i32_0 = arith.constant 0 : i32
    %c0_i32_1 = arith.constant 0 : i32
    return %c0_i32, %c0_i32_0 : i32, i32
  }
  func.func @transform_12(%arg0: i32, %arg1: i32) -> (i32, i32, i32) {
    %c0_i32 = arith.constant 0 : i32
    %c0_i32_0 = arith.constant 0 : i32
    return %arg0, %arg1, %c0_i32 : i32, i32, i32
  }
}

</mosaic_0001>

<bundles_post_ra>
// kernel: tpu_custom_call.1
= control target key start
LH: loop header
LB: loop body
LE: loop exit
PB: predicated region body
PF: predicated region fallthrough
CT: control target
= control target key end

     0   :  { %s3148_s0 = inlined_call_operand.hbm [shape: f32[2,16,32], index: 0, kind: input, shape index: {}]   ;;  %s3149_s1 = inlined_call_operand.hbm [shape: f32[2,16,32], index: 1, kind: input, shape index: {}]   ;;  %s3150_s2 = inlined_call_operand.hbm [shape: f32[2,16,32], index: 2, kind: input, shape index: {}]   ;;  %s3151_s3 = inlined_call_operand.hbm [shape: f32[2,16,16], index: 3, kind: input, shape index: {}]   ;;  %s3152_s4 = inlined_call_operand.hbm [shape: bf16[32,32], index: 4, kind: input, shape index: {}]   ;;  %s3153_s5 = inlined_call_operand.vmem [shape: f32[1,32], index: 5, kind: input, shape index: {}]   ;;  %s3154_s6 = inlined_call_operand.vmem [shape: bf16[32,32], index: 6, kind: input, shape index: {}]   ;;  %s3155_s7 = inlined_call_operand.vmem [shape: f32[1,32], index: 7, kind: input, shape index: {}]   ;;  %s3156_s8 = inlined_call_operand.hbm [shape: bf16[32,32], index: 8, kind: input, shape index: {}]   ;;  %s3157_s9 = inlined_call_operand.hbm [shape: f32[1,32], index: 9, kind: input, shape index: {}]   ;;  %s3158_s10 = inlined_call_operand.vmem [shape: bf16[4,8,32], index: 10, kind: input, shape index: {}]   ;;  %s3159_s11 = inlined_call_operand.vmem [shape: f32[1,32], index: 11, kind: input, shape index: {}]   ;;  %s3160_s12 = inlined_call_operand.hbm [shape: f32[2,16,32], index: 12, kind: output, shape index: {}]  }
   0x1   :  { %3194 = sst [smem:[#allocation35_spill]] %s3148_s0 }
   0x2   :  { %3195 = sst [smem:[#allocation36_spill]] %s3149_s1 }
   0x3   :  { %3196 = sst [smem:[#allocation37_spill]] %s3151_s3 }
   0x4   :  { %3197 = sst [smem:[#allocation38_spill]] %s3152_s4 }
   0x5   :  { %3198 = sst [smem:[#allocation39_spill]] %s3153_s5 }
   0x6   :  { %3199 = sst [smem:[#allocation40_spill]] %s3154_s6 }
   0x7   :  { %3200 = sst [smem:[#allocation41_spill]] %s3155_s7 }
   0x8   :  { %3201 = sst [smem:[#allocation42_spill]] %s3156_s8 }
   0x9   :  { %3202 = sst [smem:[#allocation43_spill]] %s3157_s9 }
   0xa   :  { %3203 = sst [smem:[#allocation44_spill]] %s3158_s10 }
   0xb   :  { %3204 = sst [smem:[#allocation45_spill]] %s3159_s11 }
   0xc   :  { %3205 = sst [smem:[#allocation46_spill]] %s3160_s12 }
   0xd   :  { %17 = vsyncpa [#allocation5], 0 }
   0xe   :  { %19 = vsyncpa [#allocation5 + $0x1], 0 }
   0xf   :  { %20 = vsyncpa [#allocation8], 0 }
  0x10   :  { %22 = vsyncpa [#allocation8 + $0x1], 0 }
  0x11   :  { %23 = vsyncpa [#allocation11], 0 }
  0x12   :  { %25 = vsyncpa [#allocation11 + $0x1], 0 }
  0x13   :  { %26 = vsyncpa [#allocation14], 0 }
  0x14   :  { %27 = vsyncpa [#allocation6], 0 }
  0x15   :  { %29 = vsyncpa [#allocation6 + $0x1], 0  ;;  %s2559_s21 = smov 0   ;;  %s2561_s22 = smov 0  }
  0x16   :  { %s2563_s23 = smov 0   ;;  %s2565_s24 = smov 0  }
  0x17   :  { %s2567_s25 = smov 0   ;;  %s2569_s26 = smov 0  }
  0x18   :  { %s2571_s27 = smov 0   ;;  %s2573_s28 = smov 0  }
  0x19   :  { %s2575_s29 = smov 0   ;;  %s2577_s30 = smov 0  }
  0x1a   :  { %s2579_s13 = smov 0  }
  0x1b LB: > { %3206 = sst [smem:[#allocation23_spill]] %s2434_s22  ;;  %s2613_s14 = sadd.s32 4294967295, %s2470_s13   ;;  %s2470_s13 = sphi %s2579_s13, %s35_s13   ;;  %s2466_s30 = sphi %s2577_s30, %s3284_s30   ;;  %s2462_s29 = sphi %s2575_s29, %s3283_s29   ;;  %s2458_s28 = sphi %s2573_s28, %s3282_s28   ;;  %s2454_s27 = sphi %s2571_s27, %s3281_s27   ;;  %s2450_s26 = sphi %s2569_s26, %s3280_s26   ;;  %s2446_s25 = sphi %s2567_s25, %s3279_s25   ;;  %s2442_s24 = sphi %s2565_s24, %s3278_s24   ;;  %s2438_s23 = sphi %s2563_s23, %s3277_s23   ;;  %s2434_s22 = sphi %s2561_s22, %s3276_s22   ;;  %s2430_s21 = sphi %s2559_s21, %s3274_s21  }
  0x1c   : > { %3207 = sst [smem:[#allocation24_spill]] %s2442_s24  ;;  %p95_p0 = scmp.ne.s32.totalorder %s2434_s22, %s2430_s21 }
  0x1d   : > { %3208 = sst [smem:[#allocation25_spill]] %s2454_s27  ;;  %p3163_p1 = scmp.eq.s32.totalorder %s2613_s14, 0 }
  0x1e   : > { %3209 = sst [smem:[#allocation26_spill]] %s2458_s28  ;;  %p1726_p2 = scmp.ge.s32.totalorder %s2470_s13, 1 }
  0x1f   : > { %3210 = sst [smem:[#allocation27_spill]] %s2613_s14  ;;  %p356_p3 = scmp.lt.s32.totalorder %s2470_s13, 5 }
  0x20   : > { %p2621_p4 = por %p95_p0, %p3163_p1  ;;  %s2472_s17 = smov [#allocation12]  }
  0x21   : > { %p2625_p5 = pnand %p1726_p2, %p356_p3  ;;  %s368_s18 = sshll.u32 %s2472_s17, 4  ;;  %s369_s18 = int_to_ptr.vmem [resolvable:$true] %s368_s18 }
  0x22   : > { %s3211_s15 = scalar_select %p2621_p4, 1, 0 }
  0x23   : > { %s3213_s16 = scalar_select %p2625_p5, 1, 0 }
  0x24   : > { %3212 = sst [smem:[#allocation28_spill]] %s3211_s15  ;;  %p1936_p6 = pneg %p2625_p5 }
  0x25   : > { %3214 = sst [smem:[#allocation29_spill]] %s3213_s16  ;;  %s2473_s20 = smov [#allocation13]  }
  0x26   : > { %p2633_p7 = pnand %p1936_p6, %p3163_p1  ;;  %s390_s21 = sshll.u32 %s2473_s20, 4  ;;  %s2637_s21 = int_to_ptr.vmem [resolvable:$true] %s390_s21 }
  0x27   : > { %s3216_s4 = sld [smem:[#allocation38_spill]] }
  0x28   : > { %s3215_s19 = scalar_select %p2633_p7, 1, 0 }
  0x29   : > { %p2647_p9 = pneg %p2633_p7 }
  0x2d   : > { %s2128_s28 = scalar_lea.hbm %s3216_s4, 256 }
  0x2e   : > { %p2129_p8 = scmp.ne.s32.totalorder %s3216_s4, %s2128_s28  ;;  %p2135_p12 = scmp.lt.u32.totalorder %s2128_s28, %s3216_s4 }
  0x30   : > { %p2131_p10 = pnand %p2647_p9, %p2129_p8 }
  0x32   : > { %p2132_p11 = pneg %p2131_p10 }
  0x34   : > { %p2137_p13 = pnand %p2135_p12, %p2132_p11 }
  0x36   : > { %2140 = shalt.err (!%p2137_p13)
}
  0x37   : > { %s2141_s11 = scalar_lea.vmem %s369_s18, 256  ;;  %p2149_p6 = scmp.lt.s32.totalorder %s369_s18, %s369_s18 }
  0x38   : > { %p2142_p0 = scmp.ne.s32.totalorder %s369_s18, %s2141_s11  ;;  %p2150_p1 = scmp.lt.s32.totalorder %s2141_s11, %s2141_s11 }
  0x3a   : > { %p2144_p2 = pnand %p2142_p0, %p2647_p9  ;;  %p2151_p4 = por %p2150_p1, %p2149_p6 }
  0x3c   : > { %p2145_p3 = pneg %p2144_p2 }
  0x3e   : > { %p2152_p5 = pnand %p2151_p4, %p2145_p3 }
  0x40   : > { %2155 = shalt.err (!%p2152_p5)
}
  0x41   : > { %s2474_s5 = smov 64   ;;  %s2475_s10 = smov 4  }
  0x42   : > { %1939 = dma.hbm_to_vmem [thread:$0]  (!%p2633_p7), %s3216_s4, 256, %s369_s18, [#allocation11], %s2474_s5, %s2474_s5, %s2475_s10  }
  0x43   : > { %s3218_s8 = sld [smem:[#allocation42_spill]] }
  0x49   : > { %s2156_s6 = scalar_lea.hbm %s3218_s8, 256 }
  0x4a   : > { %p2157_p8 = scmp.ne.s32.totalorder %s3218_s8, %s2156_s6  ;;  %p2163_p5 = scmp.lt.u32.totalorder %s2156_s6, %s3218_s8 }
  0x4c   : > { %p2159_p1 = pnand %p2157_p8, %p2647_p9 }
  0x4e   : > { %p2160_p4 = pneg %p2159_p1 }
  0x50   : > { %p2165_p10 = pnand %p2163_p5, %p2160_p4 }
  0x52   : > { %2168 = shalt.err (!%p2165_p10)
}
  0x53   : > { %s2169_s18 = scalar_lea.vmem %s2637_s21, 256  ;;  %p2177_p0 = scmp.lt.s32.totalorder %s2637_s21, %s2637_s21 }
  0x54   : > { %p2170_p11 = scmp.ne.s32.totalorder %s2637_s21, %s2169_s18  ;;  %p2178_p2 = scmp.lt.s32.totalorder %s2169_s18, %s2169_s18 }
  0x56   : > { %p2172_p12 = pnand %p2170_p11, %p2647_p9  ;;  %p2179_p3 = por %p2178_p2, %p2177_p0 }
  0x58   : > { %p2173_p13 = pneg %p2172_p12 }
  0x5a   : > { %p2180_p6 = pnand %p2179_p3, %p2173_p13 }
  0x5c   : > { %2183 = shalt.err (!%p2180_p6)
}
  0x5d   : > { %1942 = dma.hbm_to_vmem [thread:$0]  (!%p2633_p7), %s3218_s8, 256, %s2637_s21, [#allocation14], %s2474_s5, %s2474_s5, %s2475_s10  }
  0x5e   : > { %p3172_p8 = scmp.eq.s32.totalorder %s2470_s13, 0  ;;  %p89_p1 = scmp.ne.s32.totalorder %s2438_s23, %s2434_s22 }
  0x5f   : > { %p3170_p4 = scmp.lt.s32.totalorder %s2470_s13, 4  ;;  %s3171_s16 = sand.u32 1, %s2470_s13  }
  0x60   : > { %s443_s7 = sand.u32 1, %s2438_s23   ;;  %p91_p5 = por %p89_p1, %p3172_p8 }
  0x61   : > { %s2695_s12 = sshll.u32 %s443_s7, 4  ;;  %s1783_s28 = sshll.u32 %s2466_s30, 8 }
  0x62   : > { %s3219_s1 = sld [smem:[#allocation36_spill]]  ;;  %s445_s21 = scalar_lea.vmem [#allocation7], %s2695_s12 }
  0x63   : > { %s452_s5 = sshll.u32 %s445_s21, 4  ;;  %p2708_p10 = pnand %p3170_p4, %p91_p5  ;;  %s2712_s5 = int_to_ptr.vmem [resolvable:$true] %s452_s5 }
  0x64   : > { %s2716_s6 = scalar_lea.sflag [#allocation8], %s3171_s16 }
  0x65   : > { %s3220_s10 = scalar_select %p2708_p10, 1, 0 }
  0x66   : > { %p3179_p12 = pneg %p2708_p10 }
  0x67   : > { %3221 = sst [smem:[#allocation30_spill]] %s3220_s10 }
  0x68   : > { %s2703_s18 = scalar_lea.hbm %s3219_s1, %s1783_s28  ;;  %s2189_s11 = scalar_lea.hbm %s3219_s1, 512 }
  0x69   : > { %s2184_s27 = scalar_lea.hbm %s2703_s18, 256  ;;  %p2190_p2 = scmp.lt.u32.totalorder %s2703_s18, %s3219_s1 }
  0x6a   : > { %p2185_p11 = scmp.ne.s32.totalorder %s2703_s18, %s2184_s27  ;;  %p2191_p3 = scmp.lt.u32.totalorder %s2189_s11, %s2184_s27 }
  0x6b   : > { %p2193_p1 = scmp.lt.u32.totalorder %s2184_s27, %s2703_s18 }
  0x6c   : > { %p2187_p13 = pnand %p3179_p12, %p2185_p11  ;;  %p2192_p6 = por %p2191_p3, %p2190_p2 }
  0x6e   : > { %p2188_p0 = pneg %p2187_p13  ;;  %p2194_p5 = por %p2193_p1, %p2192_p6 }
  0x70   : > { %p2195_p4 = pnand %p2194_p5, %p2188_p0 }
  0x72   : > { %2198 = shalt.err (!%p2195_p4)
}
  0x73   : > { %s2199_s16 = scalar_lea.vmem %s2712_s5, 256  ;;  %s2476_s7 = smov [#allocation7]  }
  0x74   : > { %p2200_p11 = scmp.ne.s32.totalorder %s2712_s5, %s2199_s16  ;;  %s2204_s20 = sshll.u32 %s2476_s7, 4  ;;  %s2205_s20 = int_to_ptr.vmem [resolvable:$false] %s2204_s20 }
  0x75   : > { %s2206_s15 = scalar_lea.vmem %s2205_s20, 512  ;;  %p2207_p7 = scmp.lt.s32.totalorder %s2712_s5, %s2205_s20 }
  0x76   : > { %p2202_p13 = pnand %p2200_p11, %p3179_p12  ;;  %p2208_p2 = scmp.lt.s32.totalorder %s2206_s15, %s2199_s16 }
  0x78   : > { %p2203_p8 = pneg %p2202_p13  ;;  %p2209_p3 = por %p2208_p2, %p2207_p7 }
  0x7a   : > { %p2210_p6 = pnand %p2209_p3, %p2203_p8 }
  0x7c   : > { %2213 = shalt.err (!%p2210_p6)
}
  0x7d   : > { %s3180_s27 = smov 128   ;;  %s3181_s11 = smov 8  }
  0x7e   : > { %1952 = dma.hbm_to_vmem [thread:$0]  (!%p2708_p10), %s2703_s18, 256, %s2712_s5, %s2716_s6, %s3180_s27, %s3180_s27, %s3181_s11  }
  0x7f   : > { %s2752_s7 = scalar_lea.hbm %s3150_s2, %s1783_s28  ;;  %s466_s20 = scalar_lea.vmem [#allocation9], %s2695_s12 }
  0x80   : > { %s473_s15 = sshll.u32 %s466_s20, 4  ;;  %s2479_s1 = smov [#allocation15]   ;;  %s2755_s15 = int_to_ptr.vmem [resolvable:$true] %s473_s15 }
  0x81   : > { %s404_s4 = sshll.u32 %s2479_s1, 4  ;;  %s3222_s9 = sld [smem:[#allocation43_spill]]  ;;  %s405_s4 = int_to_ptr.vmem [resolvable:$true] %s404_s4 }
  0x87   : > { %s2214_s10 = scalar_lea.hbm %s3222_s9, 16 }
  0x88   : > { %p2215_p7 = scmp.ne.s32.totalorder %s3222_s9, %s2214_s10  ;;  %p2221_p0 = scmp.lt.u32.totalorder %s2214_s10, %s3222_s9 }
  0x8a   : > { %p2217_p8 = pnand %p2215_p7, %p2647_p9 }
  0x8c   : > { %p2218_p4 = pneg %p2217_p8 }
  0x8e   : > { %p2223_p1 = pnand %p2221_p0, %p2218_p4 }
  0x90   : > { %2226 = shalt.err (!%p2223_p1)
}
  0x91   : > { %s2227_s12 = scalar_lea.vmem %s405_s4, 16  ;;  %s2234_s1 = scalar_lea.vmem %s405_s4, 32 }
  0x92   : > { %p2228_p5 = scmp.ne.s32.totalorder %s405_s4, %s2227_s12  ;;  %p2235_p2 = scmp.lt.s32.totalorder %s405_s4, %s405_s4 }
  0x93   : > { %p2236_p3 = scmp.lt.s32.totalorder %s2234_s1, %s2227_s12 }
  0x94   : > { %p2230_p11 = pnand %p2228_p5, %p2647_p9 }
  0x95   : > { %p2237_p6 = por %p2236_p3, %p2235_p2 }
  0x96   : > { %p2231_p13 = pneg %p2230_p11 }
  0x98   : > { %p2238_p12 = pnand %p2237_p6, %p2231_p13 }
  0x9a   : > { %2241 = shalt.err (!%p2238_p12)
}
  0x9b   : > { %p3223_p7 = scmp.ne.s32.totalorder %s3215_s19, 0  ;;  %s1725_s8 = sadd.s32 4294967294, %s2470_s13  }
  0x9c   : > { %s44_s22 = sadd.s32 1, %s2462_s29  ;;  %s47_s19 = sadd.s32 1, %s2466_s30 }
  0x9d   : > { %1945 = dma.hbm_to_vmem [thread:$0]  (!%p3223_p7), %s3222_s9, 16, %s405_s4, [#allocation14]  }
  0x9e   : > { %p45_p9 = scmp.ge.s32.totalorder %s44_s22, 2  ;;  %s56_s17 = sadd.s32 1, %s2450_s26 }
  0x9f   : > { %p63_p12 = scmp.ne.s32.totalorder %s2450_s26, %s2446_s25  ;;  %p69_p8 = scmp.ne.s32.totalorder %s2446_s25, %s2442_s24 }
  0xa0   : > { %s3286_s22 = smov (%p45_p9, %s44_s22), 0  ;;  %s3288_s19 = smov (!%p45_p9, %s47_s19), %s2466_s30 }
  0xa1   : > { %3224 = sst [smem:[#allocation31_spill]] %s3286_s22  ;;  %s52_s5 = ssub.s32 %s2462_s29, %s3286_s22 }
  0xa2   : > { %p3225_p4 = scmp.eq.s32.totalorder %s2470_s13, 0  ;;  %p49_p1 = scmp.ge.s32.totalorder %s3288_s19, 2 }
  0xa3   : > { %p3227_p5 = scmp.eq.s32.totalorder %s2613_s14, 0  ;;  %p343_p13 = scmp.eq.s32.totalorder %s2613_s14, 3 }
  0xa4   : > { %p2790_p0 = por %p3225_p4, %p63_p12  ;;  %p349_p2 = scmp.eq.s32.totalorder %s1725_s8, 3 }
  0xa5   : > { %p2796_p11 = por %p3227_p5, %p69_p8  ;;  %s3290_s19 = smov (%p49_p1, %s3288_s19), 0 }
  0xa6   : > { %p2803_p3 = por %p343_p13, %p63_p12  ;;  %p2807_p6 = por %p349_p2, %p69_p8 }
  0xa7   : > { %s3228_s10 = scalar_select %p2796_p11, 1, 0 }
  0xa8   : > { %s3230_s21 = scalar_select %p2803_p3, 1, 0 }
  0xa9   : > { %3229 = sst [smem:[#allocation32_spill]] %s3228_s10  ;;  %s51_s20 = ssub.s32 %s2466_s30, %s3290_s19 }
  0xaa   : > { %3231 = sst [smem:[#allocation33_spill]] %s3230_s21  ;;  %s421_s28 = sand.u32 1, %s2450_s26  }
  0xab   : > { %s3232_s16 = scalar_select %p2807_p6, 1, 0 }
  0xac   : > { %s53_s18 = sor.u32 %s52_s5, %s51_s20  ;;  %p80_p7 = scmp.eq.s32.totalorder %s51_s20, 0 }
  0xad   : > { %3233 = sst [smem:[#allocation34_spill]] %s3232_s16  ;;  %p54_p9 = scmp.eq.s32.totalorder %s53_s18, 0 }
  0xae   : > { %s3234_s12 = sadd.s32 1, %s2438_s23  ;;  %s1731_s3 = sshll.u32 %s421_s28, 3 }
  0xaf   : > { %s2817_s1 = scalar_select %p80_p7, %s2438_s23, %s3234_s12  }
  0xb0   : > { %s2820_s0 = scalar_select %p54_p9, %s2450_s26, %s56_s17  }
  0xb1   : > { %s1732_s8 = sshll.u32 %s2466_s30, 1  ;;  %s425_s9 = scalar_lea.vmem [#allocation4], %s1731_s3 }
  0xb2   : > { %s430_s27 = sadd.s32 %s2462_s29, %s1732_s8  ;;  %s434_s22 = sshll.u32 %s425_s9, 4  ;;  %s2829_s22 = int_to_ptr.vmem [resolvable:$true] %s434_s22 }
  0xb3   : > { %s1733_s11 = sshll.u32 %s430_s27, 7  ;;  %s3235_s21 = sld [smem:[#allocation35_spill]] }
  0xb4   : > { %p3237_p12 = scmp.lt.s32.totalorder %s2470_s13, 4  ;;  %s3239_s9 = sld [smem:[#allocation37_spill]] }
  0xb5   : > { %s422_s20 = scalar_lea.sflag [#allocation5], %s421_s28 }
  0xb6   : > { %p2835_p8 = pnand %p3237_p12, %p2790_p0 }
  0xb8   : > { %p3193_p1 = pneg %p2835_p8 }
  0xb9   : > { %s3236_s14 = smov %s3235_s21  ;;  %s2827_s10 = scalar_lea.hbm %s3235_s21, %s1733_s11 }
  0xba   : > { %s2842_s24 = scalar_lea.hbm %s3239_s9, %s1733_s11  ;;  %s487_s21 = scalar_lea.vmem [#allocation10], %s1731_s3 }
  0xbb   : > { %s2844_s16 = sshll.u32 %s487_s21, 4  ;;  %s2242_s18 = scalar_lea.hbm %s2827_s10, 128  ;;  %s497_s16 = int_to_ptr.vmem [resolvable:$true] %s2844_s16 }
  0xbc   : > { %p2243_p4 = scmp.ne.s32.totalorder %s2827_s10, %s2242_s18  ;;  %s2247_s8 = scalar_lea.hbm %s3236_s14, 512 }
  0xbd   : > { %p2248_p13 = scmp.lt.u32.totalorder %s2827_s10, %s3236_s14  ;;  %p2249_p2 = scmp.lt.u32.totalorder %s2247_s8, %s2242_s18 }
  0xbe   : > { %p2245_p0 = pnand %p3193_p1, %p2243_p4  ;;  %p2251_p9 = scmp.lt.u32.totalorder %s2242_s18, %s2827_s10 }
  0xbf   : > { %p2250_p7 = por %p2249_p2, %p2248_p13 }
  0xc0   : > { %p2246_p5 = pneg %p2245_p0 }
  0xc1   : > { %p2252_p12 = por %p2251_p9, %p2250_p7 }
  0xc3   : > { %p2253_p6 = pnand %p2252_p12, %p2246_p5 }
  0xc5   : > { %2256 = shalt.err (!%p2253_p6)
}
  0xc6   : > { %s2257_s11 = scalar_lea.vmem %s2829_s22, 128  ;;  %s2480_s28 = smov [#allocation4]  }
  0xc7   : > { %p2258_p4 = scmp.ne.s32.totalorder %s2829_s22, %s2257_s11  ;;  %s2262_s3 = sshll.u32 %s2480_s28, 4  ;;  %s2263_s3 = int_to_ptr.vmem [resolvable:$false] %s2262_s3 }
  0xc8   : > { %s2264_s21 = scalar_lea.vmem %s2263_s3, 256  ;;  %p2265_p11 = scmp.lt.s32.totalorder %s2829_s22, %s2263_s3 }
  0xc9   : > { %p2260_p0 = pnand %p2258_p4, %p3193_p1  ;;  %p2266_p13 = scmp.lt.s32.totalorder %s2264_s21, %s2257_s11 }
  0xcb   : > { %p2261_p3 = pneg %p2260_p0  ;;  %p2267_p2 = por %p2266_p13, %p2265_p11 }
  0xcd   : > { %p2268_p7 = pnand %p2267_p2, %p2261_p3 }
  0xcf   : > { %2271 = shalt.err (!%p2268_p7)
}
  0xd0   : > { %1949 = dma.hbm_to_vmem [thread:$0]  (!%p2835_p8), %s2827_s10, 128, %s2829_s22, %s422_s20  }
  0xd1   : > { %s2272_s4 = scalar_lea.hbm %s2752_s7, 256  ;;  %p3241_p5 = pneg %p2708_p10 }
  0xd2   : > { %p2273_p6 = scmp.ne.s32.totalorder %s2752_s7, %s2272_s4  ;;  %s2277_s27 = scalar_lea.hbm %s3150_s2, 512 }
  0xd3   : > { %p2278_p11 = scmp.lt.u32.totalorder %s2752_s7, %s3150_s2  ;;  %p2279_p3 = scmp.lt.u32.totalorder %s2277_s27, %s2272_s4 }
  0xd4   : > { %p2275_p9 = pnand %p2273_p6, %p3241_p5  ;;  %p2281_p0 = scmp.lt.u32.totalorder %s2272_s4, %s2752_s7 }
  0xd5   : > { %p2280_p4 = por %p2279_p3, %p2278_p11 }
  0xd6   : > { %p2276_p12 = pneg %p2275_p9 }
  0xd7   : > { %p2282_p13 = por %p2281_p0, %p2280_p4 }
  0xd9   : > { %p2283_p2 = pnand %p2282_p13, %p2276_p12 }
  0xdb   : > { %2286 = shalt.err (!%p2283_p2)
}
  0xdc   : > { %s2287_s22 = scalar_lea.vmem %s2755_s15, 256  ;;  %p3242_p6 = pmov %p3241_p5 }
  0xdd   : > { %p2288_p7 = scmp.ne.s32.totalorder %s2755_s15, %s2287_s22  ;;  %s2481_s10 = smov [#allocation9]  }
  0xde   : > { %s2292_s20 = sshll.u32 %s2481_s10, 4  ;;  %s2293_s20 = int_to_ptr.vmem [resolvable:$false] %s2292_s20 }
  0xdf   : > { %p2290_p5 = pnand %p2288_p7, %p3242_p6  ;;  %s2294_s28 = scalar_lea.vmem %s2293_s20, 512 }
  0xe0   : > { %p2295_p1 = scmp.lt.s32.totalorder %s2755_s15, %s2293_s20  ;;  %p2296_p11 = scmp.lt.s32.totalorder %s2294_s28, %s2287_s22 }
  0xe1   : > { %p2291_p9 = pneg %p2290_p5 }
  0xe2   : > { %p2297_p3 = por %p2296_p11, %p2295_p1 }
  0xe4   : > { %p2298_p4 = pnand %p2297_p3, %p2291_p9 }
  0xe6   : > { %2301 = shalt.err (!%p2298_p4)
}
  0xe7   : > { %s3243_s3 = smov 8   ;;  %s3244_s21 = smov 128  }
  0xe8   : > { %1955 = dma.hbm_to_vmem [thread:$0]  (!%p2708_p10), %s2752_s7, 256, %s2755_s15, %s2716_s6, %s3244_s21, %s3244_s21, %s3243_s3  }
  0xe9   : > { %s3245_s4 = sand.u32 1, %s2470_s13   ;;  %s2302_s8 = scalar_lea.hbm %s2842_s24, 128 }
  0xea   : > { %s484_s12 = scalar_lea.sflag [#allocation11], %s3245_s4  ;;  %p2303_p1 = scmp.ne.s32.totalorder %s2842_s24, %s2302_s8 }
  0xeb   : > { %p3246_p12 = pneg %p2835_p8  ;;  %s2307_s5 = scalar_lea.hbm %s3239_s9, 512 }
  0xec   : > { %p2308_p2 = scmp.lt.u32.totalorder %s2842_s24, %s3239_s9  ;;  %p2309_p7 = scmp.lt.u32.totalorder %s2307_s5, %s2302_s8 }
  0xed   : > { %p2305_p0 = pnand %p2303_p1, %p3246_p12  ;;  %p2311_p10 = scmp.lt.u32.totalorder %s2302_s8, %s2842_s24 }
  0xee   : > { %p2310_p6 = por %p2309_p7, %p2308_p2 }
  0xef   : > { %p2306_p13 = pneg %p2305_p0 }
  0xf0   : > { %p2312_p5 = por %p2311_p10, %p2310_p6 }
  0xf2   : > { %p2313_p9 = pnand %p2312_p5, %p2306_p13 }
  0xf4   : > { %2316 = shalt.err (!%p2313_p9)
}
  0xf5   : > { %s2317_s6 = scalar_lea.vmem %s497_s16, 128  ;;  %p3247_p3 = pmov %p3246_p12 }
  0xf6   : > { %p2318_p11 = scmp.ne.s32.totalorder %s497_s16, %s2317_s6  ;;  %s2482_s7 = smov [#allocation10]  }
  0xf7   : > { %s2322_s15 = sshll.u32 %s2482_s7, 4  ;;  %s2323_s15 = int_to_ptr.vmem [resolvable:$false] %s2322_s15 }
  0xf8   : > { %p2320_p4 = pnand %p2318_p11, %p3247_p3  ;;  %s2324_s10 = scalar_lea.vmem %s2323_s15, 256 }
  0xf9   : > { %p2325_p12 = scmp.lt.s32.totalorder %s497_s16, %s2323_s15  ;;  %p2326_p0 = scmp.lt.s32.totalorder %s2324_s10, %s2317_s6 }
  0xfa   : > { %p2321_p1 = pneg %p2320_p4 }
  0xfb   : > { %p2327_p2 = por %p2326_p0, %p2325_p12 }
  0xfd   : > { %p2328_p7 = pnand %p2327_p2, %p2321_p1 }
  0xff   : > { %2331 = shalt.err (!%p2328_p7)
}
 0x100   : > { %1958 = dma.hbm_to_vmem [thread:$0]  (!%p2835_p8), %s2842_s24, 128, %s497_s16, %s484_s12  }
 0x101   : > { %s3248_s20 = sld [smem:[#allocation29_spill]] }
 0x107   : > { %p3249_p13 = scmp.ne.s32.totalorder %s3248_s20, 0 }
 0x108   : > { %s3250_s28 = sld [smem:[#allocation32_spill]] (!%p3249_p13)  ;;  %s2923_s3 = sand.u32 (!%p3249_p13), 1, %s2446_s25  }
 0x109   : > { %505 = sbr.rel (%p3249_p13) target bundleno = 1985 (0x7c1), region = 68  ;;  %s2926_s21 = sshll.u32 (!%p3249_p13), %s2923_s3, 3 }
 0x10a   : > { %s508_s4 = scalar_lea.sflag (!%p3249_p13), [#allocation5], %s2923_s3  ;;  %s511_s8 = scalar_lea.vmem (!%p3249_p13), [#allocation4], %s2926_s21 }
 0x10e   : > { %p3251_p6 = scmp.ne.s32.totalorder (!%p3249_p13), %s3250_s28, 0 }
 0x110   : > { %2405 = dma.done.wait (%p3251_p6), %s508_s4, 128  }
 0x111   : > { %2407 = vsyncadd (%p3251_p6), %s508_s4, 4294967168  ;;  %s3252_s17 = sld [smem:[#allocation27_spill]]  ;;  %s3253_s24 = sld [smem:[#allocation23_spill]] }
 0x112   : > { %s3254_s16 = sld [smem:[#allocation28_spill]] }
 0x117   : > { %s516_s12 = sand.u32 1, %s3252_s17   ;;  %s518_s18 = sand.u32 1, %s3253_s24  }
 0x118   : > { %s2936_s27 = sshll.u32 %s518_s18, 4  ;;  %s517_s5 = scalar_lea.sflag [#allocation8], %s516_s12 }
 0x119   : > { %s520_s11 = scalar_lea.vmem [#allocation7], %s2936_s27  ;;  %p3255_p8 = scmp.ne.s32.totalorder %s3254_s16, 0 }
 0x11b   : > { %2409 = dma.done.wait (%p3255_p8), %s517_s5, 512  }
 0x11c   : > { %2411 = vsyncadd (%p3255_p8), %s517_s5, 4294966784  ;;  %s529_s22 = scalar_lea.vmem [#allocation9], %s2936_s27  ;;  %s535_s6 = scalar_lea.sflag [#allocation11], %s516_s12 }
 0x11d   : > { %s538_s7 = scalar_lea.vmem [#allocation10], %s2926_s21 }
 0x11e   : > { %2413 = dma.done.wait (%p3251_p6), %s535_s6, 128  }
 0x11f   : > { %2415 = vsyncadd (%p3251_p6), %s535_s6, 4294967168  ;;  %p3256_p10 = scmp.eq.s32.totalorder %s3252_s17, 0 }
 0x121   : > { %2417 = dma.done.wait (%p3256_p10), [#allocation11], 256   ;;  %p3257_p5 = pmov %p3256_p10 }
 0x123   : > { %2419 = vsyncadd (%p3257_p5), [#allocation11], 4294967040  ;;  %p3258_p9 = pmov %p3257_p5 }
 0x124   : > { %p3259_p11 = pmov %p3257_p5 }
 0x125   : > { %2421 = dma.done.wait (%p3258_p9), [#allocation14], 272  }
 0x126   : > { %2423 = vsyncadd (%p3259_p11), [#allocation14], 4294967024  ;;  %s605_s15 = scalar_lea.vmem [#allocation16], %s2926_s21  ;;  %s3260_s10 = sld [smem:[#allocation25_spill]] }
 0x12c   : > { %p1752_p3 = scmp.ne.s32.totalorder %s3260_s10, 0 }
 0x12d   : > { %s3261_s4 = sld [smem:[#allocation40_spill]] (!%p1752_p3)  ;;  %v2483_v1 = vmov (!%p1752_p3), 0.0   ;;  %v2107_v2 = vld [vmem:[#allocation13] sm:$0xff] (!%p1752_p3)   ;;  %vm2484_vm0 = vmmov (!%p1752_p3), 0   ;;  %v2109_v4 = vld [vmem:[#allocation13 + $0x8] sm:$0xff] (!%p1752_p3)   ;;  %vm640_vm1 = vcmask (!%p1752_p3), 261120  }
 0x12e   : > { %610 = sbr.rel (%p1752_p3) target bundleno = 661 (0x295), region = 100  ;;  %1818 = vmatprep.subr.bf16.mxu0 (!%p1752_p3), %v2483_v1  ;;  %1826 = vmatprep.subr.bf16.mxu1 (!%p1752_p3), %v2483_v1  ;;  %v611_v5 = vld [vmem:[%s520_s11] sm:$0xff] (!%p1752_p3)  ;;  %v612_v6 = vld [vmem:[%s520_s11 + $0x8] sm:$0xff] (!%p1752_p3)  ;;  %s3262_s18 = sld [smem:[#allocation41_spill]] (!%p1752_p3)  ;;  %vm776_vm2 = vcmask (!%p1752_p3), 64512  }
 0x12f   : > { %1822 = vmatprep.mubr.msk.bf16.mxu0 (!%p1752_p3), %vm2484_vm0, %v2483_v1  ;;  %1827 = vmatpush3.bf16.msra.mxu1 (!%p1752_p3), %v2107_v2  ;;  %v614_v7 = vld [vmem:[%s529_s22] sm:$0xff] (!%p1752_p3)  ;;  %v613_v8 = vpack.c.bf16 (!%p1752_p3), %v612_v6, %v611_v5  ;;  %v615_v9 = vld [vmem:[%s529_s22 + $0x8] sm:$0xff] (!%p1752_p3)  ;;  %s2485_s27 = smov (!%p1752_p3), 104   ;;  %s2486_s5 = smov (!%p1752_p3), 120  }
 0x130   : > { %1828 = vmatprep.subr.bf16.mxu1 (!%p1752_p3), %v2483_v1  ;;  %1830 = vmatprep.mubr.msk.bf16.mxu1 (!%p1752_p3), %vm2484_vm0, %v2483_v1  ;;  %v616_v10 = vpack.c.bf16 (!%p1752_p3), %v615_v9, %v614_v7  ;;  %v1757_v11 = vld [vmem:[#allocation15] ss:$0 sm:$0xff] (!%p1752_p3)  ;;  %s2487_s11 = smov (!%p1752_p3), 112  }
 0x133   : > { %v2106_v0 = vld [vmem:[%s3261_s4] sm:$0xff] (!%p1752_p3)   ;;  %v2108_v3 = vld [vmem:[%s3261_s4 + $0x8] sm:$0xff] (!%p1752_p3)   ;;  %1829 = vmatpush3.bf16.msra.mxu1 (!%p1752_p3), %v2109_v4 }
 0x134   : > { %1819 = vmatpush3.bf16.msra.mxu0 (!%p1752_p3), %v2106_v0  ;;  %v1753_v12 = vld [vmem:[%s3262_s18] ss:$0 sm:$0xff] (!%p1752_p3) }
 0x135   : > { %1820 = vmatprep.subr.bf16.mxu0 %v2483_v1 }
 0x136   : > { %1831 = vmatmul.mubr.msk.bf16.vlgmr.msra.gmra.mrb[0].mxu1 %vm640_vm1, %v616_v10 }
 0x138   : > { %1821 = vmatpush3.bf16.msra.mxu0 %v2108_v3 }
 0x13b   : > { %1823 = vmatmul.mubr.msk.bf16.vlgmr.msra.gmra.mrb[0].mxu0 %vm640_vm1, %v613_v8 }
 0x209   : > { %v745_v15 = vpop.f32.mrb[0].mxu1 }
 0x20a   : > { %v746_v16 = vadd.f32 %v1757_v11, %v745_v15  ;;  %v1832_v18 = vpop.f32.mrb[1].mxu1 }
 0x20b   : > { %v748_v22 = vpop.f32.mrb[2].mxu1 }
 0x20c   : > { %v749_v23 = vadd.f32 %v1757_v11, %v748_v22  ;;  %v1833_v24 = vpop.f32.mrb[3].mxu1 }
 0x20e   : > { %v678_v13 = vpop.f32.mrb[0].mxu0  ;;  %v801_v27 = vpack.c.bf16 %v749_v23, %v746_v16  ;;  %v2091_v28 = vpack.i.bf16 %v749_v23, %v746_v16 }
 0x20f   : > { %v1824_v14 = vpop.f32.mrb[1].mxu0  ;;  %v679_v19 = vadd.f32 %v1753_v12, %v678_v13 }
 0x210   : > { %v681_v17 = vpop.f32.mrb[2].mxu0  ;;  %805 = vst.msk [vmem:[#allocation3] sm:$0xff] %vm776_vm2, %v801_v27 }
 0x211   : > { %v682_v20 = vadd.f32 %v1753_v12, %v681_v17  ;;  %v1825_v21 = vpop.f32.mrb[3].mxu0 }
 0x213   : > { %v772_v25 = vpack.c.bf16 %v682_v20, %v679_v19  ;;  %v2086_v26 = vpack.i.bf16 %v682_v20, %v679_v19 }
 0x215   : > { %777 = vst.msk [vmem:[#allocation2] sm:$0xff] %vm776_vm2, %v772_v25  ;;  %2087 = vrot.lane.b32.xlu1 %v2086_v26, %s2485_s27  ;;  %2077 = vrot.lane.b32.xlu0 %v2086_v26, %s2486_s5 }
 0x219   : > { %2092 = vrot.lane.b32.xlu1 %v2091_v28, %s2486_s5  ;;  %2082 = vrot.lane.b32.xlu0 %v2086_v26, %s2487_s11 }
 0x21d   : > { %2102 = vrot.lane.b32.xlu1 %v2091_v28, %s2485_s27  ;;  %2097 = vrot.lane.b32.xlu0 %v2091_v28, %s2487_s11 }
 0x287   : > { %v2088_v29 = vpop.permute.xlu1 %2087  ;;  %v2078_v30 = vpop.permute.xlu0 %2077 }
 0x288   : > { %v2090_v31 = vunpack.i.h.bf16 %v2088_v29  ;;  %v2089_v32 = vunpack.i.l.bf16 %v2088_v29  ;;  %v2080_v33 = vunpack.i.h.bf16 %v2078_v30  ;;  %v2079_v34 = vunpack.i.l.bf16 %v2078_v30 }
 0x28a   : > { %v775_v35 = vpack.c.bf16 %v2090_v31, %v2089_v32  ;;  %v773_v36 = vpack.c.bf16 %v2080_v33, %v2079_v34 }
 0x28b   : > { %v2093_v37 = vpop.permute.xlu1 %2092  ;;  %v2083_v38 = vpop.permute.xlu0 %2082 }
 0x28c   : > { %780 = vst.msk [vmem:[#allocation2 + $0x18] sm:$0xff] %vm776_vm2, %v775_v35  ;;  %778 = vst.msk [vmem:[#allocation2 + $0x8] sm:$0xff] %vm776_vm2, %v773_v36  ;;  %v2095_v39 = vunpack.i.h.bf16 %v2093_v37  ;;  %v2094_v40 = vunpack.i.l.bf16 %v2093_v37  ;;  %v2085_v41 = vunpack.i.h.bf16 %v2083_v38  ;;  %v2084_v42 = vunpack.i.l.bf16 %v2083_v38 }
 0x28e   : > { %v802_v43 = vpack.c.bf16 %v2095_v39, %v2094_v40  ;;  %v774_v44 = vpack.c.bf16 %v2085_v41, %v2084_v42 }
 0x28f   : > { %v2103_v45 = vpop.permute.xlu1 %2102  ;;  %v2098_v46 = vpop.permute.xlu0 %2097 }
 0x290   : > { %806 = vst.msk [vmem:[#allocation3 + $0x8] sm:$0xff] %vm776_vm2, %v802_v43  ;;  %779 = vst.msk [vmem:[#allocation2 + $0x10] sm:$0xff] %vm776_vm2, %v774_v44  ;;  %v2105_v47 = vunpack.i.h.bf16 %v2103_v45  ;;  %v2104_v48 = vunpack.i.l.bf16 %v2103_v45  ;;  %v2100_v49 = vunpack.i.h.bf16 %v2098_v46  ;;  %v2099_v50 = vunpack.i.l.bf16 %v2098_v46 }
 0x292   : > { %v804_v51 = vpack.c.bf16 %v2105_v47, %v2104_v48  ;;  %v803_v52 = vpack.c.bf16 %v2100_v49, %v2099_v50 }
 0x294   : > { %808 = vst.msk [vmem:[#allocation3 + $0x18] sm:$0xff] %vm776_vm2, %v804_v51  ;;  %807 = vst.msk [vmem:[#allocation3 + $0x10] sm:$0xff] %vm776_vm2, %v803_v52 }
 0x295 PF: > { %v2110_v53 = vld [vmem:[#allocation12] sm:$0xff]   ;;  %v2488_v54 = vmov 0.0   ;;  %v2111_v55 = vld [vmem:[#allocation12 + $0x8] sm:$0xff]   ;;  %vm2489_vm3 = vmmov 0   ;;  %vm900_vm4 = vcmask 64512   ;;  %vm834_vm5 = vcmask 261120  }
 0x296   : > { %1834 = vmatprep.subr.bf16.mxu0 %v2488_v54  ;;  %1842 = vmatprep.subr.bf16.mxu1 %v2488_v54  ;;  %v809_v56 = vld [vmem:[%s511_s8] sm:$0xff]  ;;  %s3263_s6 = sld [smem:[#allocation39_spill]]  ;;  %s2490_s10 = smov 104   ;;  %v895_v7 = vld [vmem:[#allocation2 + $0x18] sm:$0xff]  ;;  %vm1097_vm7 = vcmask 130048   ;;  %vm1329_vm8 = vcmask 1043456  }
 0x297   : > { %1835 = vmatpush3.bf16.msra.mxu0 %v2110_v53  ;;  %1838 = vmatprep.mubr.msk.bf16.mxu0 %vm2489_vm3, %v2488_v54  ;;  %v892_v57 = vld [vmem:[#allocation2] sm:$0xff]  ;;  %v810_v59 = vpack.c.bf16 %v809_v56, %v809_v56  ;;  %v893_v60 = vld [vmem:[#allocation2 + $0x8] sm:$0xff]  ;;  %v894_v0 = vld [vmem:[#allocation2 + $0x10] sm:$0xff]  ;;  %s2491_s20 = smov 120   ;;  %s2492_s28 = smov 112   ;;  %v1043_v10 = vsel %vm900_vm4, %v895_v7, 0 }
 0x298   : > { %1836 = vmatprep.subr.bf16.mxu0 %v2488_v54  ;;  %v905_v58 = vsel %vm900_vm4, %v892_v57, 0  ;;  %1844 = vmatprep.mubr.msk.bf16.mxu1 %vm2489_vm3, %v2488_v54  ;;  %v951_v61 = vsel %vm900_vm4, %v893_v60, 0  ;;  %v997_v6 = vsel %vm900_vm4, %v894_v0, 0  ;;  %v1089_v15 = vld [vmem:[%s538_s7] sm:$0xff]  ;;  %v896_v49 = vld [vmem:[#allocation3] sm:$0xff]  ;;  %s3264_s16 = sld [smem:[#allocation44_spill]] }
 0x299   : > { %1843 = vmatpush3.bf16.xpose.msra.mxu1 %v905_v58  ;;  %vm1090_vm6 = vcmp.eq.f32.partialorder %v1089_v15, 0.0  ;;  %s3265_s8 = sld [smem:[#allocation26_spill]]  ;;  %s3266_s22 = sld [smem:[#allocation25_spill]] }
 0x29a   : > { %1854 = vmatprep.subr.bf16.mxu1 %v2488_v54  ;;  %s3268_s24 = sld [smem:[#allocation45_spill]]  ;;  %s1543_s12 = sshll.u32 %s605_s15, 4  ;;  %s3084_s12 = int_to_ptr.vmem [resolvable:$true] %s1543_s12 }
 0x29b   : > { %1837 = vmatpush3.bf16.msra.mxu0 %v2111_v55  ;;  %v898_v7 = vld [vmem:[#allocation3 + $0x10] sm:$0xff]  ;;  %s3269_s5 = sld [smem:[#allocation46_spill]] }
 0x29c   : > { %1848 = vmatprep.subr.bf16.mxu0 %v2488_v54  ;;  %v1761_v62 = vld [vmem:[%s3263_s6] ss:$0 sm:$0xff] }
 0x29e   : > { %1839 = vmatmul.mubr.msk.bf16.vlgmr.msra.gmra.mrb[0].mxu0 %vm834_vm5, %v810_v59 }
 0x29f   : > { %1850 = vmatprep.mubr.msk.bf16.mxu0 %vm2489_vm3, %v2488_v54  ;;  %s1779_s6 = sshll.u32 %s3265_s8, 1  ;;  %s1528_s8 = scalar_lea.sflag [#allocation6], %s2923_s3 }
 0x2a4   : > { %1849 = vmatpush3.bf16.xpose.msra.mxu0 %v951_v61 }
 0x2a5   : > { %1860 = vmatprep.subr.bf16.mxu0 %v2488_v54 }
 0x371   : > { %v872_v63 = vpop.f32.mrb[0].mxu0 }
 0x372   : > { %v873_v1 = vadd.f32 %v1761_v62, %v872_v63  ;;  %v1840_v2 = vpop.f32.mrb[1].mxu0 }
 0x373   : > { %v875_v3 = vpop.f32.mrb[2].mxu0  ;;  %v897_v2 = vld [vmem:[#allocation3 + $0x8] sm:$0xff] }
 0x374   : > { %885 = vrot.lane.b32.xlu1 %v873_v1, %s2490_s10  ;;  %879 = vrot.lane.b32.xlu0 %v873_v1, %s2491_s20  ;;  %v1841_v4 = vpop.f32.mrb[3].mxu0  ;;  %v888_v5 = vpack.c.bf16 %v873_v1, %v873_v1  ;;  %s1539_s10 = sadd.s32 %s3266_s22, %s1779_s6  ;;  %s3267_s20 = sld [smem:[#allocation33_spill]] }
 0x375   : > { %s1780_s17 = sshll.u32 %s1539_s10, 7  ;;  %s2332_s22 = scalar_lea.vmem %s3084_s12, 128 }
 0x376   : > { %1845 = vmatmul.mubr.msk.bf16.vlgmr.msra.gmra.mrb[0].mxu1 %vm900_vm4, %v888_v5  ;;  %s3082_s11 = scalar_lea.hbm %s3269_s5, %s1780_s17  ;;  %p2333_p4 = scmp.ne.s32.totalorder %s3084_s12, %s2332_s22 }
 0x377   : > { %1855 = vmatpush3.bf16.xpose.msra.mxu1 %v997_v6  ;;  %1856 = vmatprep.mubr.msk.bf16.mxu1 %vm2489_vm3, %v2488_v54  ;;  %s2493_s6 = smov [#allocation16]  }
 0x378   : > { %882 = vrot.lane.b32.xlu0 %v873_v1, %s2492_s28  ;;  %1866 = vmatprep.subr.bf16.mxu1 %v2488_v54  ;;  %s2336_s10 = sshll.u32 %s2493_s6, 4  ;;  %s2337_s10 = int_to_ptr.vmem [resolvable:$false] %s2336_s10 }
 0x379   : > { %s2338_s28 = scalar_lea.vmem %s2337_s10, 256  ;;  %p2339_p2 = scmp.lt.s32.totalorder %s3084_s12, %s2337_s10 }
 0x37a   : > { %p3270_p1 = scmp.ne.s32.totalorder %s3267_s20, 0  ;;  %p2340_p7 = scmp.lt.s32.totalorder %s2338_s28, %s2332_s22 }
 0x37c   : > { %p2334_p12 = pnand %p2333_p4, %p3270_p1  ;;  %p2341_p13 = por %p2340_p7, %p2339_p2 }
 0x37e   : > { %p2335_p0 = pneg %p2334_p12 }
 0x380   : > { %p2342_p6 = pnand %p2341_p13, %p2335_p0 }
 0x3e6   : > { %v880_v8 = vpop.permute.xlu0 %879  ;;  %v886_v13 = vpop.permute.xlu1 %885 }
 0x3e7   : > { %v889_v9 = vpack.c.bf16 %v880_v8, %v880_v8  ;;  %v891_v14 = vpack.c.bf16 %v886_v13, %v886_v13 }
 0x3e9   : > { %1851 = vmatmul.mubr.msk.bf16.vlgmr.msra.gmra.mrb[4].mxu0 %vm900_vm4, %v889_v9 }
 0x3ea   : > { %1861 = vmatpush3.bf16.xpose.msra.mxu0 %v1043_v10  ;;  %v883_v11 = vpop.permute.xlu0 %882  ;;  %1862 = vmatprep.mubr.msk.bf16.mxu0 %vm2489_vm3, %v2488_v54 }
 0x3eb   : > { %v890_v12 = vpack.c.bf16 %v883_v11, %v883_v11  ;;  %1872 = vmatprep.subr.bf16.mxu0 %v2488_v54 }
 0x3ed   : > { %1857 = vmatmul.mubr.msk.bf16.vlgmr.msra.gmra.mrb[4].mxu1 %vm900_vm4, %v890_v12 }
 0x3ee   : > { %1868 = vmatprep.mubr.msk.bf16.mxu1 %vm2489_vm3, %v2488_v54  ;;  %1867 = vmatpush3.bf16.msra.mxu1 %v896_v49 }
 0x3ef   : > { %1878 = vmatprep.subr.bf16.mxu1 %v2488_v54 }
 0x3f1   : > { %1863 = vmatmul.mubr.msk.bf16.vlgmr.msra.gmra.mrb[8].mxu0 %vm900_vm4, %v891_v14  ;;  %v899_v14 = vld [vmem:[#allocation3 + $0x18] sm:$0xff] }
 0x3f2   : > { %1874 = vmatprep.mubr.msk.bf16.mxu0 %vm2489_vm3, %v2488_v54  ;;  %1873 = vmatpush3.bf16.msra.mxu0 %v897_v2 }
 0x3f3   : > { %1884 = vmatprep.subr.bf16.mxu0 %v2488_v54 }
 0x449   : > { %v941_v16 = vpop.f32.mrb[0].mxu1 }
 0x44a   : > { %v1085_v17 = vmul.f32 0.35355338, %v941_v16  ;;  %v1846_v18 = vpop.f32.mrb[1].mxu1  ;;  %v1322_v16 = vld [vmem:[%s3264_s16] sm:$0xf] }
 0x44b   : > { %v944_v19 = vpop.f32.mrb[2].mxu1 }
 0x44c   : > { %v1847_v20 = vpop.f32.mrb[3].mxu1  ;;  %v1093_v21 = vsel %vm1090_vm6, -1e+09, %v1085_v17  ;;  %v1331_v19 = vsel %vm1329_vm8, %v1322_v16, 0 }
 0x44d   : > { %v1098_v22 = vsel %vm1097_vm7, %v1093_v21, -inf }
 0x44e   : > { %1099 = vmax.xlane.f32.xlu1 %v1098_v22 }
 0x4bc   : > { %v987_v23 = vpop.f32.mrb[4].mxu0 }
 0x4bd   : > { %v1086_v24 = vmul.f32 0.35355338, %v987_v23  ;;  %v1852_v25 = vpop.f32.mrb[5].mxu0 }
 0x4be   : > { %v990_v26 = vpop.f32.mrb[6].mxu0  ;;  %v1324_v25 = vld [vmem:[%s3264_s16 + $0x8] sm:$0xf] }
 0x4bf   : > { %v1853_v27 = vpop.f32.mrb[7].mxu0  ;;  %v1094_v28 = vsel %vm1090_vm6, -1e+09, %v1086_v24 }
 0x4c0   : > { %v1033_v29 = vpop.f32.mrb[4].mxu1  ;;  %v1101_v30 = vsel %vm1097_vm7, %v1094_v28, -inf }
 0x4c1   : > { %v1087_v31 = vmul.f32 0.35355338, %v1033_v29  ;;  %v1858_v32 = vpop.f32.mrb[5].mxu1  ;;  %1102 = vmax.xlane.f32.xlu0 %v1101_v30  ;;  %v1423_v29 = vsel %vm1329_vm8, %v1324_v25, 0 }
 0x4c2   : > { %v1036_v33 = vpop.f32.mrb[6].mxu1  ;;  %v1325_v32 = vld [vmem:[%s3264_s16 + $0xc] sm:$0xf] }
 0x4c3   : > { %v1859_v34 = vpop.f32.mrb[7].mxu1  ;;  %v1095_v35 = vsel %vm1090_vm6, -1e+09, %v1087_v31 }
 0x4c4   : > { %v1079_v36 = vpop.f32.mrb[8].mxu0  ;;  %v1104_v37 = vsel %vm1097_vm7, %v1095_v35, -inf }
 0x4c5   : > { %v1088_v38 = vmul.f32 0.35355338, %v1079_v36  ;;  %1105 = vmax.xlane.f32.xlu0 %v1104_v37  ;;  %v1864_v39 = vpop.f32.mrb[9].mxu0  ;;  %v1469_v36 = vsel %vm1329_vm8, %v1325_v32, 0 }
 0x4c6   : > { %v1082_v40 = vpop.f32.mrb[10].mxu0 }
 0x4c7   : > { %v1865_v41 = vpop.f32.mrb[11].mxu0  ;;  %v1096_v42 = vsel %vm1090_vm6, -1e+09, %v1088_v38 }
 0x4c8   : > { %v1107_v43 = vsel %vm1097_vm7, %v1096_v42, -inf }
 0x4c9   : > { %1108 = vmax.xlane.f32.xlu1 %v1107_v43 }
 0x4db   : > { %v1100_v44 = vpop.xlane.xlu1 %1099 }
 0x4dc   : > { %v1110_v45 = vsub.f32 %v1093_v21, %v1100_v44  ;;  %v1323_v21 = vld [vmem:[%s3264_s16 + $0x4] sm:$0xf] }
 0x4dd   : > { %v1377_v24 = vsel %vm1329_vm8, %v1323_v21, 0 }
 0x4de   : > { %v1114_v46 = vmul.f32 1.442695, %v1110_v45 }
 0x4e0   : > { %2112 = vpow2.f32 %v1114_v46 }
 0x4ea   : > { %v2113_v47 = vpop.eup %2112 }
 0x4eb   : > { %v1122_v48 = vsel %vm1097_vm7, %v2113_v47, 0.0 }
 0x4ec   : > { %1123 = vadd.xlane.f32.xlu0 %v1122_v48 }
 0x54e   : > { %v1103_v50 = vpop.xlane.xlu0 %1102 }
 0x54f   : > { %v1111_v51 = vsub.f32 %v1094_v28, %v1103_v50 }
 0x551   : > { %v1116_v52 = vmul.f32 1.442695, %v1111_v51 }
 0x552   : > { %v1106_v53 = vpop.xlane.xlu0 %1105 }
 0x553   : > { %2114 = vpow2.f32 %v1116_v52  ;;  %v1112_v55 = vsub.f32 %v1095_v35, %v1106_v53 }
 0x555   : > { %v1118_v56 = vmul.f32 1.442695, %v1112_v55 }
 0x556   : > { %v1109_v57 = vpop.xlane.xlu1 %1108 }
 0x557   : > { %2116 = vpow2.f32 %v1118_v56  ;;  %v1113_v58 = vsub.f32 %v1096_v42, %v1109_v57 }
 0x559   : > { %v1120_v59 = vmul.f32 1.442695, %v1113_v58 }
 0x55b   : > { %2118 = vpow2.f32 %v1120_v59 }
 0x55d   : > { %v2115_v60 = vpop.eup %2114 }
 0x55e   : > { %v1125_v61 = vsel %vm1097_vm7, %v2115_v60, 0.0 }
 0x55f   : > { %1126 = vadd.xlane.f32.xlu1 %v1125_v61 }
 0x561   : > { %v2117_v62 = vpop.eup %2116 }
 0x562   : > { %v1128_v63 = vsel %vm1097_vm7, %v2117_v62, 0.0 }
 0x563   : > { %1129 = vadd.xlane.f32.xlu0 %v1128_v63 }
 0x565   : > { %v2119_v0 = vpop.eup %2118 }
 0x566   : > { %v1131_v1 = vsel %vm1097_vm7, %v2119_v0, 0.0 }
 0x567   : > { %1132 = vadd.xlane.f32.xlu1 %v1131_v1 }
 0x579   : > { %v1124_v3 = vpop.xlane.xlu0 %1123 }
 0x57a   : > { %2120 = vrcp.f32 %v1124_v3 }
 0x584   : > { %v2121_v4 = vpop.eup %2120 }
 0x585   : > { %v1138_v5 = vmul.f32 %v2121_v4, %v2113_v47  ;;  %v1777_v4 = vld [vmem:[%s3268_s24] ss:$0 sm:$0xff] }
 0x587   : > { %v1142_v6 = vpack.c.bf16 %v1138_v5, %v1138_v5 }
 0x589   : > { %1869 = vmatmul.mubr.msk.bf16.vlgmr.msra.gmra.mrb[8].mxu1 %vm1097_vm7, %v1142_v6 }
 0x58a   : > { %1879 = vmatpush3.bf16.msra.mxu1 %v898_v7  ;;  %1880 = vmatprep.mubr.msk.bf16.mxu1 %vm2489_vm3, %v2488_v54 }
 0x58b   : > { %1890 = vmatprep.subr.bf16.mxu1 %v2488_v54 }
 0x5ec   : > { %v1127_v8 = vpop.xlane.xlu1 %1126 }
 0x5ed   : > { %2122 = vrcp.f32 %v1127_v8 }
 0x5f0   : > { %v1130_v9 = vpop.xlane.xlu0 %1129 }
 0x5f1   : > { %2124 = vrcp.f32 %v1130_v9 }
 0x5f4   : > { %v1133_v10 = vpop.xlane.xlu1 %1132 }
 0x5f5   : > { %2126 = vrcp.f32 %v1133_v10 }
 0x5f7   : > { %v2123_v11 = vpop.eup %2122 }
 0x5f8   : > { %v1139_v12 = vmul.f32 %v2123_v11, %v2115_v60 }
 0x5fa   : > { %v1143_v13 = vpack.c.bf16 %v1139_v12, %v1139_v12 }
 0x5fb   : > { %v2125_v15 = vpop.eup %2124 }
 0x5fc   : > { %v1140_v17 = vmul.f32 %v2125_v15, %v2117_v62  ;;  %1875 = vmatmul.mubr.msk.bf16.vlgmr.msra.gmra.mrb[12].mxu0 %vm1097_vm7, %v1143_v13 }
 0x5fd   : > { %1885 = vmatpush3.bf16.msra.mxu0 %v899_v14  ;;  %1886 = vmatprep.mubr.msk.bf16.mxu0 %vm2489_vm3, %v2488_v54 }
 0x5fe   : > { %v1144_v18 = vpack.c.bf16 %v1140_v17, %v1140_v17  ;;  %1896 = vmatprep.subr.bf16.mxu0 %v2488_v54 }
 0x5ff   : > { %v2127_v20 = vpop.eup %2126 }
 0x600   : > { %v1141_v22 = vmul.f32 %v2127_v20, %v2119_v0  ;;  %1881 = vmatmul.mubr.msk.bf16.vlgmr.msra.gmra.mrb[12].mxu1 %vm1097_vm7, %v1144_v18 }
 0x601   : > { %1891 = vmatpush3.bf16.msra.mxu1 %v1331_v19  ;;  %1892 = vmatprep.mubr.msk.bf16.mxu1 %vm2489_vm3, %v2488_v54 }
 0x602   : > { %v1145_v23 = vpack.c.bf16 %v1141_v22, %v1141_v22  ;;  %1902 = vmatprep.subr.bf16.mxu1 %v2488_v54 }
 0x604   : > { %1887 = vmatmul.mubr.msk.bf16.vlgmr.msra.gmra.mrb[16].mxu0 %vm1097_vm7, %v1145_v23 }
 0x605   : > { %1897 = vmatpush3.bf16.msra.mxu0 %v1377_v24  ;;  %1898 = vmatprep.mubr.msk.bf16.mxu0 %vm2489_vm3, %v2488_v54 }
 0x606   : > { %1908 = vmatprep.subr.bf16.mxu0 %v2488_v54 }
 0x65c   : > { %v1183_v26 = vpop.f32.mrb[8].mxu1 }
 0x65d   : > { %v1318_v27 = vpack.c.bf16 %v1183_v26, %v1183_v26  ;;  %v1870_v28 = vpop.f32.mrb[9].mxu1 }
 0x65e   : > { %v1186_v30 = vpop.f32.mrb[10].mxu1 }
 0x65f   : > { %v1871_v31 = vpop.f32.mrb[11].mxu1  ;;  %1893 = vmatmul.mubr.msk.bf16.vlgmr.msra.gmra.mrb[16].mxu1 %vm900_vm4, %v1318_v27 }
 0x660   : > { %1903 = vmatpush3.bf16.msra.mxu1 %v1423_v29  ;;  %1904 = vmatprep.mubr.msk.bf16.mxu1 %vm2489_vm3, %v2488_v54 }
 0x6cf   : > { %v1226_v33 = vpop.f32.mrb[12].mxu0 }
 0x6d0   : > { %v1319_v34 = vpack.c.bf16 %v1226_v33, %v1226_v33  ;;  %v1876_v35 = vpop.f32.mrb[13].mxu0 }
 0x6d1   : > { %v1229_v37 = vpop.f32.mrb[14].mxu0 }
 0x6d2   : > { %v1877_v38 = vpop.f32.mrb[15].mxu0  ;;  %1899 = vmatmul.mubr.msk.bf16.vlgmr.msra.gmra.mrb[20].mxu0 %vm900_vm4, %v1319_v34 }
 0x6d3   : > { %1909 = vmatpush3.bf16.msra.mxu0 %v1469_v36  ;;  %v1269_v39 = vpop.f32.mrb[12].mxu1  ;;  %1910 = vmatprep.mubr.msk.bf16.mxu0 %vm2489_vm3, %v2488_v54 }
 0x6d4   : > { %v1320_v40 = vpack.c.bf16 %v1269_v39, %v1269_v39  ;;  %v1882_v41 = vpop.f32.mrb[13].mxu1 }
 0x6d5   : > { %v1272_v42 = vpop.f32.mrb[14].mxu1 }
 0x6d6   : > { %v1883_v43 = vpop.f32.mrb[15].mxu1  ;;  %1905 = vmatmul.mubr.msk.bf16.vlgmr.msra.gmra.mrb[20].mxu1 %vm900_vm4, %v1320_v40 }
 0x6d7   : > { %v1312_v44 = vpop.f32.mrb[16].mxu0 }
 0x6d8   : > { %v1321_v45 = vpack.c.bf16 %v1312_v44, %v1312_v44  ;;  %v1888_v46 = vpop.f32.mrb[17].mxu0 }
 0x6d9   : > { %v1315_v47 = vpop.f32.mrb[18].mxu0 }
 0x6da   : > { %v1889_v48 = vpop.f32.mrb[19].mxu0  ;;  %1911 = vmatmul.mubr.msk.bf16.vlgmr.msra.gmra.mrb[24].mxu0 %vm900_vm4, %v1321_v45 }
 0x732   : > { %v1367_v49 = vpop.f32.mrb[16].mxu1 }
 0x733   : > { %v1894_v50 = vpop.f32.mrb[17].mxu1  ;;  %v1511_v53 = vsel %vm834_vm5, %v1367_v49, 0.0 }
 0x734   : > { %v1370_v51 = vpop.f32.mrb[18].mxu1 }
 0x735   : > { %v1895_v52 = vpop.f32.mrb[19].mxu1 }
 0x7a5   : > { %v1413_v54 = vpop.f32.mrb[20].mxu0 }
 0x7a6   : > { %v1512_v55 = vsel %vm834_vm5, %v1413_v54, 0.0  ;;  %v1900_v56 = vpop.f32.mrb[21].mxu0 }
 0x7a7   : > { %v1513_v57 = vadd.f32 %v1512_v55, %v1511_v53  ;;  %v1416_v58 = vpop.f32.mrb[22].mxu0 }
 0x7a8   : > { %v1901_v59 = vpop.f32.mrb[23].mxu0 }
 0x7a9   : > { %v1459_v60 = vpop.f32.mrb[20].mxu1 }
 0x7aa   : > { %v1514_v61 = vsel %vm834_vm5, %v1459_v60, 0.0  ;;  %v1906_v62 = vpop.f32.mrb[21].mxu1 }
 0x7ab   : > { %v1515_v63 = vadd.f32 %v1514_v61, %v1513_v57  ;;  %v1462_v0 = vpop.f32.mrb[22].mxu1 }
 0x7ac   : > { %v1907_v1 = vpop.f32.mrb[23].mxu1 }
 0x7ad   : > { %v1505_v2 = vpop.f32.mrb[24].mxu0 }
 0x7ae   : > { %v1516_v3 = vsel %vm834_vm5, %v1505_v2, 0.0  ;;  %v1912_v5 = vpop.f32.mrb[25].mxu0 }
 0x7af   : > { %v1517_v6 = vadd.f32 %v1516_v3, %v1515_v63  ;;  %v1508_v7 = vpop.f32.mrb[26].mxu0 }
 0x7b0   : > { %v1913_v8 = vpop.f32.mrb[27].mxu0 }
 0x7b1   : > { %v1525_v9 = vadd.f32 %v1777_v4, %v1517_v6 }
 0x7b3   : > { %1526 = vst.msk [vmem:[%s605_s15] sm:$0xff] %vm834_vm5, %v1525_v9 }
 0x7b4   : > { %2345 = shalt.err (!%p2342_p6)
}
 0x7b5   : > { %s2346_s3 = scalar_lea.hbm %s3082_s11, 128  ;;  %s2350_s7 = scalar_lea.hbm %s3269_s5, 512 }
 0x7b6   : > { %p2347_p8 = scmp.ne.s32.totalorder %s3082_s11, %s2346_s3  ;;  %p2351_p9 = scmp.lt.u32.totalorder %s3082_s11, %s3269_s5 }
 0x7b7   : > { %p2352_p11 = scmp.lt.u32.totalorder %s2350_s7, %s2346_s3  ;;  %p2354_p4 = scmp.lt.u32.totalorder %s2346_s3, %s3082_s11 }
 0x7b8   : > { %p2348_p10 = pnand %p2347_p8, %p3270_p1 }
 0x7b9   : > { %p2353_p3 = por %p2352_p11, %p2351_p9 }
 0x7ba   : > { %p2349_p5 = pneg %p2348_p10 }
 0x7bb   : > { %p2355_p12 = por %p2354_p4, %p2353_p3 }
 0x7bd   : > { %p2356_p0 = pnand %p2355_p12, %p2349_p5 }
 0x7bf   : > { %2359 = shalt.err (!%p2356_p0)
}
 0x7c0   : > { %1934 = dma.vmem_to_hbm [thread:$0]  (%p3270_p1), %s3084_s12, 128, %s3082_s11, %s1528_s8  }
 0x7c1 PF: > { %s3271_s18 = sld [smem:[#allocation24_spill]]  ;;  %s3272_s27 = sld [smem:[#allocation34_spill]] }
 0x7c2   : > { %p1970_p2 = scmp.ge.s32.totalorder %s2470_s13, 2 }
 0x7c7   : > { %s1555_s22 = sand.u32 1, %s3271_s18   ;;  %p3273_p7 = scmp.ne.s32.totalorder %s3272_s27, 0 }
 0x7c8   : > { %s1556_s6 = scalar_lea.sflag [#allocation6], %s1555_s22 }
 0x7c9   : > { %p1960_p13 = pnand %p1970_p2, %p3273_p7 }
 0x7cb   : > { %2425 = dma.done.wait (!%p1960_p13), %s1556_s6, 128  }
 0x7cc   : > { %2427 = vsyncadd (!%p1960_p13), %s1556_s6, 4294967168  ;;  %s35_s13 = sadd.s32 1, %s2470_s13   ;;  %s3274_s21 = sld [smem:[#allocation23_spill]] }
 0x7cd   : > { %p32_p6 = scmp.ge.s32.totalorder %s35_s13, 6   ;;  %s3275_s20 = sld [smem:[#allocation31_spill]] }
 0x7ce   : > { %s3276_s22 = smov %s2438_s23  ;;  %s3277_s23 = smov %s2817_s1 }
 0x7cf   : > { %s3278_s24 = smov %s2446_s25  ;;  %s3279_s25 = smov %s2450_s26 }
 0x7d0   : > { %s3280_s26 = smov %s2820_s0  ;;  %s3281_s27 = smov %s2462_s29 }
 0x7d1   : > { %s3282_s28 = smov %s2466_s30  ;;  %s3284_s30 = smov %s3290_s19 }
 0x7d2   :  { %34 = sbr.rel (!%p32_p6) target bundleno = 27 (0x1b), region = 166 }
 0x7d3   : > { %s3283_s29 = smov %s3275_s20 }
 0x7d9   :  { %1561 = vsyncpa [#allocation5], 1 }
 0x7da   :  { %1563 = vsyncpa [#allocation5 + $0x1], 1 }
 0x7db   :  { %1564 = vsyncpa [#allocation8], 1 }
 0x7dc   :  { %1566 = vsyncpa [#allocation8 + $0x1], 1 }
 0x7dd   :  { %1567 = vsyncpa [#allocation11], 1 }
 0x7de   :  { %1569 = vsyncpa [#allocation11 + $0x1], 1 }
 0x7df   :  { %1570 = vsyncpa [#allocation14], 1 }
 0x7e0   :  { %1571 = vsyncpa [#allocation6], 1 }
 0x7e1   :  { %1573 = vsyncpa [#allocation6 + $0x1], 1 }

</bundles_post_ra>
